<compile_context>
chip_gen: v7x
topology: tpu7x:2x2x1
jax: 0.10.0
libtpu: 0.0.40
codegen_flags: <defaults>
</compile_context>

<pallas_src>
import functools

import jax
import jax.numpy as jnp
from jax.experimental import pallas as pl
from jax.experimental.pallas import tpu as pltpu


# ----------------------------- activations ---------------------------------
def _leaky_relu(x):
    return jnp.where(x > 0, x, 0.2 * x)


def _sigmoid(x):
    # Numerically stable sigmoid via tanh (EUP path).
    return 0.5 * (jnp.tanh(0.5 * x) + 1.0)


_VMEM_SPEC = pl.BlockSpec(memory_space=pltpu.MemorySpace.VMEM)


# ------------------------------ kernels -------------------------------------
def _convT_act_kernel(w_ref, a_ref, o_ref, *, act):
    # out (Cout, tm) = W (Cout, K) @ A^T (K, tm), bf16 in, f32 accumulate.
    acc = jnp.dot(w_ref[...], a_ref[...], preferred_element_type=jnp.float32)
    o_ref[...] = act(acc)


def _convT_bn_act_kernel(w_ref, a_ref, g_ref, b_ref, o_ref, *, act, eps):
    acc = jnp.dot(w_ref[...], a_ref[...], preferred_element_type=jnp.float32)
    # BatchNorm2d (training): per-channel stats over all N*H*W columns (lanes).
    mean = jnp.mean(acc, axis=1, keepdims=True)
    var = jnp.mean(jnp.square(acc - mean), axis=1, keepdims=True)
    xn = (acc - mean) * jax.lax.rsqrt(var + eps)
    o_ref[...] = act(xn * g_ref[...] + b_ref[...])


def _conv4_main2_kernel(w_ref, a_ref, g_ref, b_ref, w5_ref, sel_ref,
                        h_ref, y_ref, *, eps):
    # Layer-4 conv + BN + tanh, plus main2 (4x4 conv + sigmoid) fused in.
    acc = jnp.dot(w_ref[...], a_ref[...], preferred_element_type=jnp.float32)
    mean = jnp.mean(acc, axis=1, keepdims=True)
    var = jnp.mean(jnp.square(acc - mean), axis=1, keepdims=True)
    h = jnp.tanh((acc - mean) * jax.lax.rsqrt(var + eps) * g_ref[...] + b_ref[...])
    h_ref[...] = h                                            # (Cout, B*16)
    # main2: y[b] = sigmoid(sum_{c,s} h[c, b*16+s] * w5[c, s])
    s = jnp.sum(h * w5_ref[...], axis=0, keepdims=True)       # (1, B*16)
    logit = jnp.dot(s, sel_ref[...], preferred_element_type=jnp.float32)  # (1, B)
    y_ref[...] = _sigmoid(logit)


def _z_fc_kernel(hflat_ref, z_ref, wz1_ref, wz2_ref, g_ref, b_ref,
                 wfa_ref, wfb_ref, fcb_ref, y_ref, *, eps):
    # mainz: two 1x1 convs (= matmuls) with BN + LeakyReLU, then fc as 2 dots.
    h1 = _leaky_relu(jnp.dot(z_ref[...], wz1_ref[...],
                             preferred_element_type=jnp.float32))          # (B, 8H)
    h2 = jnp.dot(h1.astype(jnp.bfloat16), wz2_ref[...],
                 preferred_element_type=jnp.float32)                       # (B, 8H*16)
    mean = jnp.mean(h2, axis=0, keepdims=True)
    var = jnp.mean(jnp.square(h2 - mean), axis=0, keepdims=True)
    h2 = _leaky_relu((h2 - mean) * jax.lax.rsqrt(var + eps) * g_ref[...] + b_ref[...])
    # fc(concat([h_flat, h2])) == dot(h_flat, Wa) + dot(h2, Wb) + bias
    da = jnp.dot(hflat_ref[...], wfa_ref[...], preferred_element_type=jnp.float32)
    db = jnp.dot(h2.astype(jnp.bfloat16), wfb_ref[...],
                 preferred_element_type=jnp.float32)
    y_ref[...] = _sigmoid(da + db + fcb_ref[...])


# ------------------------------ conv glue -----------------------------------
def _im2col_t(x_cm, kh, kw, stride, pad):
    """x_cm: (C, B, H, W) channel-major -> A^T: (C*kh*kw, B*OH*OW).

    Row order is (Cin, kh, kw) which matches w.reshape(Cout, -1) directly.
    """
    c, b, h, w = x_cm.shape
    xp = jnp.pad(x_cm, ((0, 0), (0, 0), (pad, pad), (pad, pad)))
    oh = (h + 2 * pad - kh) // stride + 1
    ow = (w + 2 * pad - kw) // stride + 1
    cols = []
    for i in range(kh):
        for j in range(kw):
            cols.append(
                xp[:, :, i:i + stride * (oh - 1) + 1:stride,
                         j:j + stride * (ow - 1) + 1:stride])
    pat = jnp.stack(cols, axis=1)                      # (C, kh*kw, B, OH, OW)
    return pat.reshape(c * kh * kw, b * oh * ow), oh, ow


def conv_t_act(x_cm, w, stride, pad, act, *, tm=512):
    """Conv2d (bias=False) + activation, channel-major, M-tiled grid."""
    cout = w.shape[0]
    a_t, oh, ow = _im2col_t(x_cm, w.shape[2], w.shape[3], stride, pad)
    a_t = a_t.astype(jnp.bfloat16)
    wm = w.reshape(cout, -1).astype(jnp.bfloat16)
    k, m = a_t.shape
    kern = functools.partial(_convT_act_kernel, act=act)
    if tm is not None and m % tm == 0 and tm % 128 == 0 and m // tm > 1:
        out = pl.pallas_call(
            kern,
            out_shape=jax.ShapeDtypeStruct((cout, m), jnp.float32),
            grid=(m // tm,),
            in_specs=[pl.BlockSpec((cout, k), lambda j: (0, 0)),
                      pl.BlockSpec((k, tm), lambda j: (0, j))],
            out_specs=pl.BlockSpec((cout, tm), lambda j: (0, j)),
            compiler_params=pltpu.CompilerParams(
                dimension_semantics=("parallel",)),
        )(wm, a_t)
    else:
        out = pl.pallas_call(
            kern,
            out_shape=jax.ShapeDtypeStruct((cout, m), jnp.float32),
            in_specs=[_VMEM_SPEC, _VMEM_SPEC],
            out_specs=_VMEM_SPEC,
        )(wm, a_t)
    return out.reshape(cout, x_cm.shape[1], oh, ow)


def conv_t_bn_act(x_cm, w, stride, pad, gamma, beta, act, eps=1e-5):
    """Conv2d (bias=False) + BatchNorm2d + activation, channel-major.

    Whole-array (no M grid) so the batch statistics stay exact.
    """
    cout = w.shape[0]
    a_t, oh, ow = _im2col_t(x_cm, w.shape[2], w.shape[3], stride, pad)
    a_t = a_t.astype(jnp.bfloat16)
    wm = w.reshape(cout, -1).astype(jnp.bfloat16)
    m = a_t.shape[1]
    out = pl.pallas_call(
        functools.partial(_convT_bn_act_kernel, act=act, eps=eps),
        out_shape=jax.ShapeDtypeStruct((cout, m), jnp.float32),
        in_specs=[_VMEM_SPEC] * 4,
        out_specs=_VMEM_SPEC,
    )(wm, a_t, gamma.reshape(-1, 1), beta.reshape(-1, 1))
    return out.reshape(cout, x_cm.shape[1], oh, ow)


def conv4_and_main2(x_cm, w, gamma, beta, w5, batch, eps=1e-5):
    """Layer-4 (conv+BN+tanh) fused with main2 (4x4 conv + sigmoid)."""
    cout = w.shape[0]
    a_t, oh, ow = _im2col_t(x_cm, w.shape[2], w.shape[3], 2, 1)
    a_t = a_t.astype(jnp.bfloat16)
    wm = w.reshape(cout, -1).astype(jnp.bfloat16)
    m = a_t.shape[1]
    spat = oh * ow
    # main2 weight broadcast over batch: w5t[c, b*spat + s] = w5[0, c, s]
    w5t = jnp.tile(w5.reshape(w5.shape[1], -1), (1, batch)).astype(jnp.float32)
    # batch-group selection matrix: sel[m_idx, b] = (m_idx // spat == b)
    sel = (jnp.arange(m)[:, None] // spat
           == jnp.arange(batch)[None, :]).astype(jnp.float32)
    h_cm, y = pl.pallas_call(
        functools.partial(_conv4_main2_kernel, eps=eps),
        out_shape=(jax.ShapeDtypeStruct((cout, m), jnp.float32),
                   jax.ShapeDtypeStruct((1, batch), jnp.float32)),
        in_specs=[_VMEM_SPEC] * 6,
        out_specs=(_VMEM_SPEC, _VMEM_SPEC),
    )(wm, a_t, gamma.reshape(-1, 1), beta.reshape(-1, 1), w5t, sel)
    return h_cm.reshape(cout, batch, oh, ow), y


def mainz_and_fc(p, h_flat, z, batch, eps=1e-5):
    """mainz (two 1x1 convs + BN + LeakyReLU) + fc (Linear + Sigmoid), fused."""
    k_half = h_flat.shape[1]
    wz1_t = p["wz1"].reshape(p["wz1"].shape[0], -1).T.astype(jnp.bfloat16)
    wz2_t = p["wz2"].reshape(p["wz2"].shape[0], -1).T.astype(jnp.bfloat16)
    wfa = p["fc_w"][:, :k_half].T.astype(jnp.bfloat16)   # multiplies h_flat
    wfb = p["fc_w"][:, k_half:].T.astype(jnp.bfloat16)   # multiplies h2
    return pl.pallas_call(
        functools.partial(_z_fc_kernel, eps=eps),
        out_shape=jax.ShapeDtypeStruct((batch, 1), jnp.float32),
        in_specs=[_VMEM_SPEC] * 9,
        out_specs=_VMEM_SPEC,
    )(h_flat.astype(jnp.bfloat16), z.reshape(batch, -1).astype(jnp.bfloat16),
      wz1_t, wz2_t, p["gz2"].reshape(1, -1), p["bz2"].reshape(1, -1),
      wfa, wfb, p["fc_b"].reshape(1, 1))


# --------------------------- model definition --------------------------------
def init_params(key, image_size=64, latent_size=16, num_chanel=3, hidden=8):
    del image_size
    h = hidden
    ks = jax.random.split(key, 8)
    s = 0.05

    def nrm(k, shape):
        return (s * jax.random.normal(k, shape)).astype(jnp.float32)

    p = {
        "w1": nrm(ks[0], (h, num_chanel, 4, 4)),
        "w2": nrm(ks[1], (2 * h, h, 4, 4)),
        "g2": jnp.ones((2 * h,), jnp.float32), "b2": jnp.zeros((2 * h,), jnp.float32),
        "w3": nrm(ks[2], (4 * h, 2 * h, 4, 4)),
        "g3": jnp.ones((4 * h,), jnp.float32), "b3": jnp.zeros((4 * h,), jnp.float32),
        "w4": nrm(ks[3], (8 * h, 4 * h, 4, 4)),
        "g4": jnp.ones((8 * h,), jnp.float32), "b4": jnp.zeros((8 * h,), jnp.float32),
        "w5": nrm(ks[4], (1, 8 * h, 4, 4)),
        "wz1": nrm(ks[5], (8 * h, latent_size, 1, 1)),
        "wz2": nrm(ks[6], (8 * h * 4 * 4, 8 * h, 1, 1)),
        "gz2": jnp.ones((8 * h * 4 * 4,), jnp.float32),
        "bz2": jnp.zeros((8 * h * 4 * 4,), jnp.float32),
        "fc_w": nrm(ks[7], (1, 8 * h * 4 * 4 * 2)),
        "fc_b": jnp.zeros((1,), jnp.float32),
    }
    return p


def discriminator_forward(params, x, z=None, flag=False):
    p = params
    b = x.shape[0]
    # Channel-major (C, B, H, W) — one cheap transpose of the small input,
    # then no layout changes until the final 4x4 feature map.
    h = jnp.transpose(x, (1, 0, 2, 3))
    # main1
    h = conv_t_act(h, p["w1"], 2, 1, _leaky_relu, tm=512)
    h = conv_t_bn_act(h, p["w2"], 2, 1, p["g2"], p["b2"], _leaky_relu)
    h = conv_t_bn_act(h, p["w3"], 2, 1, p["g3"], p["b3"], _leaky_relu)
    # layer 4 (+ main2 y) fused; h_cm is (8H, B, 4, 4) channel-major
    h_cm, y0 = conv4_and_main2(h, p["w4"], p["g4"], p["b4"], p["w5"], b)
    h_nchw = jnp.transpose(h_cm, (1, 0, 2, 3))            # (B, 8H, 4, 4) = torch h

    if not flag:
        return y0.reshape(b, 1), h_nchw

    h_flat = h_nchw.reshape(b, -1)                        # == torch .view(B, -1)
    y = mainz_and_fc(p, h_flat, z, b)
    return y, h_flat


# ---------------------------------- main -------------------------------------
if __name__ == "__main__":
    IMAGE_SIZE, LATENT, NUM_CH, HIDDEN, BATCH = 64, 16, 3, 8, 2

    key = jax.random.PRNGKey(0)
    kx, kz, kp = jax.random.split(key, 3)
    x = jax.random.normal(kx, (BATCH, NUM_CH, IMAGE_SIZE, IMAGE_SIZE), jnp.float32)
    z = jax.random.normal(kz, (BATCH, LATENT), jnp.float32)
    params = init_params(kp, IMAGE_SIZE, LATENT, NUM_CH, HIDDEN)

    fwd_plain = jax.jit(lambda p, xx: discriminator_forward(p, xx, None, False))
    fwd_flag = jax.jit(lambda p, xx, zz: discriminator_forward(p, xx, zz, True))

    # flag=False path: (y, h) with y (B, 1), h (B, 8H, 4, 4)
    y0, h0 = fwd_plain(params, x)
    # flag=True path: (y, h_flat) with y (B, 1), h_flat (B, 8H*4*4)
    y1, h1 = fwd_flag(params, x, z)

    jax.block_until_ready((y0, h0, y1, h1))
    assert y0.shape == (BATCH, 1) and h0.shape == (BATCH, 8 * HIDDEN, 4, 4)
    assert y1.shape == (BATCH, 1) and h1.shape == (BATCH, 8 * HIDDEN * 4 * 4)
    print("KERNEL_OK")
</pallas_src>

<mosaic_0001>
module attributes {stable_mosaic.version = 11 : i64} {
  func.func @_convT_act_kernel(%arg0: i32, %arg1: memref<8x48xbf16, #tpu.memory_space<vmem>>, %arg2: memref<48x512xbf16, #tpu.memory_space<vmem>>, %arg3: memref<8x512xf32, #tpu.memory_space<vmem>>) attributes {dimension_semantics = [#tpu.dimension_semantics<parallel>], iteration_bounds = array<i64: 4>, scalar_prefetch = 0 : i64, scratch_operands = 0 : i64, tpu.core_type = #tpu.core_type<tc>, window_params = [{pipeline_mode = #tpu.pipeline_mode<synchronous>, transform_indices = @transform_0, window_bounds = array<i64: 8, 48>}, {transform_indices = @transform_1, window_bounds = array<i64: 48, 512>}, {transform_indices = @transform_2, window_bounds = array<i64: 8, 512>}]} {
    %c0 = arith.constant 0 : index
    %c0_0 = arith.constant 0 : index
    %0 = vector.load %arg1[%c0, %c0_0] : memref<8x48xbf16, #tpu.memory_space<vmem>>, vector<8x48xbf16>
    %c0_1 = arith.constant 0 : index
    %c0_2 = arith.constant 0 : index
    %1 = vector.load %arg2[%c0_1, %c0_2] : memref<48x512xbf16, #tpu.memory_space<vmem>>, vector<48x512xbf16>
    %cst = arith.constant dense<0.000000e+00> : vector<8x512xf32>
    %2 = tpu.matmul %0, %1, %cst {dimension_numbers = #tpu.dot_dimension_numbers<[1], [0], [0], [1], [0, 0, 1, 1], [], []>} : vector<8x48xbf16>, vector<48x512xbf16>, vector<8x512xf32> -> vector<8x512xf32>
    %cst_3 = arith.constant 0.000000e+00 : f32
    %3 = vector.broadcast %cst_3 : f32 to vector<8x512xf32>
    %4 = arith.cmpf ogt, %2, %3 : vector<8x512xf32>
    %cst_4 = arith.constant 2.000000e-01 : f32
    %5 = vector.broadcast %cst_4 : f32 to vector<8x512xf32>
    %6 = arith.mulf %5, %2 : vector<8x512xf32>
    %7 = arith.select %4, %2, %6 : vector<8x512xi1>, vector<8x512xf32>
    %c0_5 = arith.constant 0 : index
    %c0_6 = arith.constant 0 : index
    %8 = vector.load %arg3[%c0_5, %c0_6] : memref<8x512xf32, #tpu.memory_space<vmem>>, vector<8x512xf32>
    tpu.vector_store %arg3[%c0_5, %c0_6], %7 {strides = array<i32>} : memref<8x512xf32, #tpu.memory_space<vmem>>, vector<8x512xf32>,
    return
  }
  func.func @transform_0(%arg0: i32) -> (i32, i32) {
    %c0_i32 = arith.constant 0 : i32
    %c0_i32_0 = arith.constant 0 : i32
    %c0_i32_1 = arith.constant 0 : i32
    return %c0_i32, %c0_i32_0 : i32, i32
  }
  func.func @transform_1(%arg0: i32) -> (i32, i32) {
    %c0_i32 = arith.constant 0 : i32
    %c0_i32_0 = arith.constant 0 : i32
    return %c0_i32, %arg0 : i32, i32
  }
  func.func @transform_2(%arg0: i32) -> (i32, i32) {
    %c0_i32 = arith.constant 0 : i32
    %c0_i32_0 = arith.constant 0 : i32
    return %c0_i32, %arg0 : i32, i32
  }
}

module attributes {stable_mosaic.version = 11 : i64} {
  func.func @_convT_bn_act_kernel(%arg0: memref<16x128xbf16, #tpu.memory_space<vmem>>, %arg1: memref<128x512xbf16, #tpu.memory_space<vmem>>, %arg2: memref<16x1xf32, #tpu.memory_space<vmem>>, %arg3: memref<16x1xf32, #tpu.memory_space<vmem>>, %arg4: memref<16x512xf32, #tpu.memory_space<vmem>>) attributes {dimension_semantics = [], scalar_prefetch = 0 : i64, scratch_operands = 0 : i64, tpu.core_type = #tpu.core_type<tc>} {
    %c0 = arith.constant 0 : index
    %c0_0 = arith.constant 0 : index
    %0 = vector.load %arg0[%c0, %c0_0] : memref<16x128xbf16, #tpu.memory_space<vmem>>, vector<16x128xbf16>
    %c0_1 = arith.constant 0 : index
    %c0_2 = arith.constant 0 : index
    %1 = vector.load %arg1[%c0_1, %c0_2] : memref<128x512xbf16, #tpu.memory_space<vmem>>, vector<128x512xbf16>
    %cst = arith.constant dense<0.000000e+00> : vector<16x512xf32>
    %2 = tpu.matmul %0, %1, %cst {dimension_numbers = #tpu.dot_dimension_numbers<[1], [0], [0], [1], [0, 0, 1, 1], [], []>} : vector<16x128xbf16>, vector<128x512xbf16>, vector<16x512xf32> -> vector<16x512xf32>
    %cst_3 = arith.constant dense<0.000000e+00> : vector<16xf32>
    %3 = vector.multi_reduction <add>, %2, %cst_3 [1] : vector<16x512xf32> to vector<16xf32>
    %4 = vector.shape_cast %3 : vector<16xf32> to vector<16x1xf32>
    %cst_4 = arith.constant 5.120000e+02 : f32
    %5 = vector.broadcast %cst_4 : f32 to vector<16x1xf32>
    %6 = arith.divf %4, %5 : vector<16x1xf32>
    %7 = vector.broadcast %6 : vector<16x1xf32> to vector<16x512xf32>
    %8 = arith.subf %2, %7 : vector<16x512xf32>
    %9 = arith.mulf %8, %8 : vector<16x512xf32>
    %cst_5 = arith.constant dense<0.000000e+00> : vector<16xf32>
    %10 = vector.multi_reduction <add>, %9, %cst_5 [1] : vector<16x512xf32> to vector<16xf32>
    %11 = vector.shape_cast %10 : vector<16xf32> to vector<16x1xf32>
    %cst_6 = arith.constant 5.120000e+02 : f32
    %12 = vector.broadcast %cst_6 : f32 to vector<16x1xf32>
    %13 = arith.divf %11, %12 : vector<16x1xf32>
    %14 = vector.broadcast %6 : vector<16x1xf32> to vector<16x512xf32>
    %15 = arith.subf %2, %14 : vector<16x512xf32>
    %cst_7 = arith.constant 9.99999974E-6 : f32
    %16 = vector.broadcast %cst_7 : f32 to vector<16x1xf32>
    %17 = arith.addf %13, %16 : vector<16x1xf32>
    %18 = math.rsqrt %17 : vector<16x1xf32>
    %19 = vector.broadcast %18 : vector<16x1xf32> to vector<16x512xf32>
    %20 = arith.mulf %15, %19 : vector<16x512xf32>
    %c0_8 = arith.constant 0 : index
    %c0_9 = arith.constant 0 : index
    %21 = vector.load %arg2[%c0_8, %c0_9] : memref<16x1xf32, #tpu.memory_space<vmem>>, vector<16x1xf32>
    %22 = vector.broadcast %21 : vector<16x1xf32> to vector<16x512xf32>
    %23 = arith.mulf %20, %22 : vector<16x512xf32>
    %c0_10 = arith.constant 0 : index
    %c0_11 = arith.constant 0 : index
    %24 = vector.load %arg3[%c0_10, %c0_11] : memref<16x1xf32, #tpu.memory_space<vmem>>, vector<16x1xf32>
    %25 = vector.broadcast %24 : vector<16x1xf32> to vector<16x512xf32>
    %26 = arith.addf %23, %25 : vector<16x512xf32>
    %cst_12 = arith.constant 0.000000e+00 : f32
    %27 = vector.broadcast %cst_12 : f32 to vector<16x512xf32>
    %28 = arith.cmpf ogt, %26, %27 : vector<16x512xf32>
    %cst_13 = arith.constant 2.000000e-01 : f32
    %29 = vector.broadcast %cst_13 : f32 to vector<16x512xf32>
    %30 = arith.mulf %29, %26 : vector<16x512xf32>
    %31 = arith.select %28, %26, %30 : vector<16x512xi1>, vector<16x512xf32>
    %c0_14 = arith.constant 0 : index
    %c0_15 = arith.constant 0 : index
    %32 = vector.load %arg4[%c0_14, %c0_15] : memref<16x512xf32, #tpu.memory_space<vmem>>, vector<16x512xf32>
    tpu.vector_store %arg4[%c0_14, %c0_15], %31 {strides = array<i32>} : memref<16x512xf32, #tpu.memory_space<vmem>>, vector<16x512xf32>,
    return
  }
}

module attributes {stable_mosaic.version = 11 : i64} {
  func.func @_convT_bn_act_kernel(%arg0: memref<32x256xbf16, #tpu.memory_space<vmem>>, %arg1: memref<256x128xbf16, #tpu.memory_space<vmem>>, %arg2: memref<32x1xf32, #tpu.memory_space<vmem>>, %arg3: memref<32x1xf32, #tpu.memory_space<vmem>>, %arg4: memref<32x128xf32, #tpu.memory_space<vmem>>) attributes {dimension_semantics = [], scalar_prefetch = 0 : i64, scratch_operands = 0 : i64, tpu.core_type = #tpu.core_type<tc>} {
    %c0 = arith.constant 0 : index
    %c0_0 = arith.constant 0 : index
    %0 = vector.load %arg0[%c0, %c0_0] : memref<32x256xbf16, #tpu.memory_space<vmem>>, vector<32x256xbf16>
    %c0_1 = arith.constant 0 : index
    %c0_2 = arith.constant 0 : index
    %1 = vector.load %arg1[%c0_1, %c0_2] : memref<256x128xbf16, #tpu.memory_space<vmem>>, vector<256x128xbf16>
    %cst = arith.constant dense<0.000000e+00> : vector<32x128xf32>
    %2 = tpu.matmul %0, %1, %cst {dimension_numbers = #tpu.dot_dimension_numbers<[1], [0], [0], [1], [0, 0, 1, 1], [], []>} : vector<32x256xbf16>, vector<256x128xbf16>, vector<32x128xf32> -> vector<32x128xf32>
    %cst_3 = arith.constant dense<0.000000e+00> : vector<32xf32>
    %3 = vector.multi_reduction <add>, %2, %cst_3 [1] : vector<32x128xf32> to vector<32xf32>
    %4 = vector.shape_cast %3 : vector<32xf32> to vector<32x1xf32>
    %cst_4 = arith.constant 1.280000e+02 : f32
    %5 = vector.broadcast %cst_4 : f32 to vector<32x1xf32>
    %6 = arith.divf %4, %5 : vector<32x1xf32>
    %7 = vector.broadcast %6 : vector<32x1xf32> to vector<32x128xf32>
    %8 = arith.subf %2, %7 : vector<32x128xf32>
    %9 = arith.mulf %8, %8 : vector<32x128xf32>
    %cst_5 = arith.constant dense<0.000000e+00> : vector<32xf32>
    %10 = vector.multi_reduction <add>, %9, %cst_5 [1] : vector<32x128xf32> to vector<32xf32>
    %11 = vector.shape_cast %10 : vector<32xf32> to vector<32x1xf32>
    %cst_6 = arith.constant 1.280000e+02 : f32
    %12 = vector.broadcast %cst_6 : f32 to vector<32x1xf32>
    %13 = arith.divf %11, %12 : vector<32x1xf32>
    %14 = vector.broadcast %6 : vector<32x1xf32> to vector<32x128xf32>
    %15 = arith.subf %2, %14 : vector<32x128xf32>
    %cst_7 = arith.constant 9.99999974E-6 : f32
    %16 = vector.broadcast %cst_7 : f32 to vector<32x1xf32>
    %17 = arith.addf %13, %16 : vector<32x1xf32>
    %18 = math.rsqrt %17 : vector<32x1xf32>
    %19 = vector.broadcast %18 : vector<32x1xf32> to vector<32x128xf32>
    %20 = arith.mulf %15, %19 : vector<32x128xf32>
    %c0_8 = arith.constant 0 : index
    %c0_9 = arith.constant 0 : index
    %21 = vector.load %arg2[%c0_8, %c0_9] : memref<32x1xf32, #tpu.memory_space<vmem>>, vector<32x1xf32>
    %22 = vector.broadcast %21 : vector<32x1xf32> to vector<32x128xf32>
    %23 = arith.mulf %20, %22 : vector<32x128xf32>
    %c0_10 = arith.constant 0 : index
    %c0_11 = arith.constant 0 : index
    %24 = vector.load %arg3[%c0_10, %c0_11] : memref<32x1xf32, #tpu.memory_space<vmem>>, vector<32x1xf32>
    %25 = vector.broadcast %24 : vector<32x1xf32> to vector<32x128xf32>
    %26 = arith.addf %23, %25 : vector<32x128xf32>
    %cst_12 = arith.constant 0.000000e+00 : f32
    %27 = vector.broadcast %cst_12 : f32 to vector<32x128xf32>
    %28 = arith.cmpf ogt, %26, %27 : vector<32x128xf32>
    %cst_13 = arith.constant 2.000000e-01 : f32
    %29 = vector.broadcast %cst_13 : f32 to vector<32x128xf32>
    %30 = arith.mulf %29, %26 : vector<32x128xf32>
    %31 = arith.select %28, %26, %30 : vector<32x128xi1>, vector<32x128xf32>
    %c0_14 = arith.constant 0 : index
    %c0_15 = arith.constant 0 : index
    %32 = vector.load %arg4[%c0_14, %c0_15] : memref<32x128xf32, #tpu.memory_space<vmem>>, vector<32x128xf32>
    tpu.vector_store %arg4[%c0_14, %c0_15], %31 {strides = array<i32>} : memref<32x128xf32, #tpu.memory_space<vmem>>, vector<32x128xf32>,
    return
  }
}

module attributes {stable_mosaic.version = 11 : i64} {
  func.func @_conv4_main2_kernel(%arg0: memref<64x512xbf16, #tpu.memory_space<vmem>>, %arg1: memref<512x32xbf16, #tpu.memory_space<vmem>>, %arg2: memref<64x1xf32, #tpu.memory_space<vmem>>, %arg3: memref<64x1xf32, #tpu.memory_space<vmem>>, %arg4: memref<64x32xf32, #tpu.memory_space<vmem>>, %arg5: memref<32x2xf32, #tpu.memory_space<vmem>>, %arg6: memref<64x32xf32, #tpu.memory_space<vmem>>, %arg7: memref<1x2xf32, #tpu.memory_space<vmem>>) attributes {dimension_semantics = [], scalar_prefetch = 0 : i64, scratch_operands = 0 : i64, tpu.core_type = #tpu.core_type<tc>} {
    %c0 = arith.constant 0 : index
    %c0_0 = arith.constant 0 : index
    %0 = vector.load %arg0[%c0, %c0_0] : memref<64x512xbf16, #tpu.memory_space<vmem>>, vector<64x512xbf16>
    %c0_1 = arith.constant 0 : index
    %c0_2 = arith.constant 0 : index
    %1 = vector.load %arg1[%c0_1, %c0_2] : memref<512x32xbf16, #tpu.memory_space<vmem>>, vector<512x32xbf16>
    %cst = arith.constant dense<0.000000e+00> : vector<64x32xf32>
    %2 = tpu.matmul %0, %1, %cst {dimension_numbers = #tpu.dot_dimension_numbers<[1], [0], [0], [1], [0, 0, 1, 1], [], []>} : vector<64x512xbf16>, vector<512x32xbf16>, vector<64x32xf32> -> vector<64x32xf32>
    %cst_3 = arith.constant dense<0.000000e+00> : vector<64xf32>
    %3 = vector.multi_reduction <add>, %2, %cst_3 [1] : vector<64x32xf32> to vector<64xf32>
    %4 = vector.shape_cast %3 : vector<64xf32> to vector<64x1xf32>
    %cst_4 = arith.constant 3.200000e+01 : f32
    %5 = vector.broadcast %cst_4 : f32 to vector<64x1xf32>
    %6 = arith.divf %4, %5 : vector<64x1xf32>
    %7 = vector.broadcast %6 : vector<64x1xf32> to vector<64x32xf32>
    %8 = arith.subf %2, %7 : vector<64x32xf32>
    %9 = arith.mulf %8, %8 : vector<64x32xf32>
    %cst_5 = arith.constant dense<0.000000e+00> : vector<64xf32>
    %10 = vector.multi_reduction <add>, %9, %cst_5 [1] : vector<64x32xf32> to vector<64xf32>
    %11 = vector.shape_cast %10 : vector<64xf32> to vector<64x1xf32>
    %cst_6 = arith.constant 3.200000e+01 : f32
    %12 = vector.broadcast %cst_6 : f32 to vector<64x1xf32>
    %13 = arith.divf %11, %12 : vector<64x1xf32>
    %14 = vector.broadcast %6 : vector<64x1xf32> to vector<64x32xf32>
    %15 = arith.subf %2, %14 : vector<64x32xf32>
    %cst_7 = arith.constant 9.99999974E-6 : f32
    %16 = vector.broadcast %cst_7 : f32 to vector<64x1xf32>
    %17 = arith.addf %13, %16 : vector<64x1xf32>
    %18 = math.rsqrt %17 : vector<64x1xf32>
    %19 = vector.broadcast %18 : vector<64x1xf32> to vector<64x32xf32>
    %20 = arith.mulf %15, %19 : vector<64x32xf32>
    %c0_8 = arith.constant 0 : index
    %c0_9 = arith.constant 0 : index
    %21 = vector.load %arg2[%c0_8, %c0_9] : memref<64x1xf32, #tpu.memory_space<vmem>>, vector<64x1xf32>
    %22 = vector.broadcast %21 : vector<64x1xf32> to vector<64x32xf32>
    %23 = arith.mulf %20, %22 : vector<64x32xf32>
    %c0_10 = arith.constant 0 : index
    %c0_11 = arith.constant 0 : index
    %24 = vector.load %arg3[%c0_10, %c0_11] : memref<64x1xf32, #tpu.memory_space<vmem>>, vector<64x1xf32>
    %25 = vector.broadcast %24 : vector<64x1xf32> to vector<64x32xf32>
    %26 = arith.addf %23, %25 : vector<64x32xf32>
    %27 = math.tanh %26 : vector<64x32xf32>
    %c0_12 = arith.constant 0 : index
    %c0_13 = arith.constant 0 : index
    %28 = vector.load %arg6[%c0_12, %c0_13] : memref<64x32xf32, #tpu.memory_space<vmem>>, vector<64x32xf32>
    tpu.vector_store %arg6[%c0_12, %c0_13], %27 {strides = array<i32>} : memref<64x32xf32, #tpu.memory_space<vmem>>, vector<64x32xf32>,
    %c0_14 = arith.constant 0 : index
    %c0_15 = arith.constant 0 : index
    %29 = vector.load %arg4[%c0_14, %c0_15] : memref<64x32xf32, #tpu.memory_space<vmem>>, vector<64x32xf32>
    %30 = arith.mulf %27, %29 : vector<64x32xf32>
    %cst_16 = arith.constant dense<0.000000e+00> : vector<32xf32>
    %31 = vector.multi_reduction <add>, %30, %cst_16 [0] : vector<64x32xf32> to vector<32xf32>
    %32 = vector.shape_cast %31 : vector<32xf32> to vector<1x32xf32>
    %c0_17 = arith.constant 0 : index
    %c0_18 = arith.constant 0 : index
    %33 = vector.load %arg5[%c0_17, %c0_18] : memref<32x2xf32, #tpu.memory_space<vmem>>, vector<32x2xf32>
    %cst_19 = arith.constant dense<0.000000e+00> : vector<1x2xf32>
    %34 = tpu.matmul %32, %33, %cst_19 {dimension_numbers = #tpu.dot_dimension_numbers<[1], [0], [0], [1], [0, 0, 1, 1], [], []>} : vector<1x32xf32>, vector<32x2xf32>, vector<1x2xf32> -> vector<1x2xf32>
    %cst_20 = arith.constant 5.000000e-01 : f32
    %35 = vector.broadcast %cst_20 : f32 to vector<1x2xf32>
    %36 = arith.mulf %35, %34 : vector<1x2xf32>
    %37 = math.tanh %36 : vector<1x2xf32>
    %cst_21 = arith.constant 1.000000e+00 : f32
    %38 = vector.broadcast %cst_21 : f32 to vector<1x2xf32>
    %39 = arith.addf %37, %38 : vector<1x2xf32>
    %cst_22 = arith.constant 5.000000e-01 : f32
    %40 = vector.broadcast %cst_22 : f32 to vector<1x2xf32>
    %41 = arith.mulf %40, %39 : vector<1x2xf32>
    %c0_23 = arith.constant 0 : index
    %c0_24 = arith.constant 0 : index
    %42 = vector.load %arg7[%c0_23, %c0_24] : memref<1x2xf32, #tpu.memory_space<vmem>>, vector<1x2xf32>
    tpu.vector_store %arg7[%c0_23, %c0_24], %41 {strides = array<i32>} : memref<1x2xf32, #tpu.memory_space<vmem>>, vector<1x2xf32>,
    return
  }
}

</mosaic_0001>

<bundles_post_ra>
// kernel: _lambda_.4
= control target key start
LH: loop header
LB: loop body
LE: loop exit
PB: predicated region body
PF: predicated region fallthrough
CT: control target
= control target key end

     0   :  { %s537_s9 = smov 0   ;;  %s539_s10 = smov 0   ;;  %s592_s0 = inlined_call_operand.vmem [shape: bf16[8,48], index: 0, kind: input, shape index: {}]   ;;  %s593_s1 = inlined_call_operand.vmem [shape: bf16[48,2048], index: 1, kind: input, shape index: {}]   ;;  %s594_s2 = inlined_call_operand.vmem [shape: f32[8,2048], index: 2, kind: output, shape index: {}]  }
   0x1   :  { %s541_s11 = smov 0  }
   0x2 LB: > { %s426_s12 = sadd.s32 4294967295, %s519_s11   ;;  %s554_s13 = sadd.s32 1, %s519_s11   ;;  %s519_s11 = sphi %s541_s11, %s597_s11   ;;  %s515_s10 = sphi %s539_s10, %s596_s10   ;;  %s511_s9 = sphi %s537_s9, %s595_s9  }
   0x3   : > { %s37_s14 = ssub.s32 %s519_s11, %s554_s13  ;;  %s40_s15 = sadd.s32 1, %s515_s10 }
   0x4   : > { %p38_p0 = scmp.eq.s32.totalorder %s37_s14, 0  ;;  %p47_p1 = scmp.ne.s32.totalorder %s515_s10, %s511_s9 }
   0x5   : > { %p48_p2 = scmp.eq.s32.totalorder %s519_s11, 0  ;;  %p429_p4 = scmp.ge.s32.totalorder %s519_s11, 4 }
   0x6   : > { %s563_s16 = scalar_select %p38_p0, %s515_s10, %s40_s15  }
   0x7   : > { %p49_p3 = por %p48_p2, %p47_p1  ;;  %102 = sbr.rel (%p429_p4) target bundleno = 24 (0x18), region = 20 }
   0xe   : > { %105 = sbr.rel (!%p49_p3) target bundleno = 24 (0x18), region = 24  ;;  %s107_s17 = sand.u32 (%p49_p3), 1, %s515_s10  }
   0xf   : > { %s451_s18 = sshll.u32 (%p49_p3), %s519_s11, 4  ;;  %s452_s19 = smul.u32 (%p49_p3), 96, %s107_s17 }
  0x10   : > { %s112_s22 = scalar_lea.vmem (%p49_p3), %s593_s1, %s451_s18 }
  0x11   : > { %v125_v0 = vld [vmem:[%s112_s22] sm:$0xff] (%p49_p3)  ;;  %v127_v1 = vld [vmem:[%s112_s22 + $0x8] sm:$0xff] (%p49_p3)  ;;  %s109_s23 = scalar_lea.vmem (%p49_p3), [#allocation2], %s452_s19 }
  0x12   : > { %v129_v2 = vld [vmem:[%s112_s22 + $0x40] sm:$0xff] (%p49_p3)  ;;  %v131_v3 = vld [vmem:[%s112_s22 + $0x48] sm:$0xff] (%p49_p3)  ;;  %126 = vst [vmem:[%s109_s23] sm:$0xff] (%p49_p3), %v125_v0  ;;  %128 = vst [vmem:[%s109_s23 + $0x8] sm:$0xff] (%p49_p3), %v127_v1 }
  0x13   : > { %v133_v4 = vld [vmem:[%s112_s22 + $0x80] sm:$0xff] (%p49_p3)  ;;  %v135_v5 = vld [vmem:[%s112_s22 + $0x88] sm:$0xff] (%p49_p3)  ;;  %130 = vst [vmem:[%s109_s23 + $0x10] sm:$0xff] (%p49_p3), %v129_v2  ;;  %132 = vst [vmem:[%s109_s23 + $0x18] sm:$0xff] (%p49_p3), %v131_v3 }
  0x14   : > { %134 = vst [vmem:[%s109_s23 + $0x20] sm:$0xff] (%p49_p3), %v133_v4  ;;  %136 = vst [vmem:[%s109_s23 + $0x28] sm:$0xff] (%p49_p3), %v135_v5  ;;  %v137_v6 = vld [vmem:[%s112_s22 + $0xc0] sm:$0xff] (%p49_p3)  ;;  %v139_v7 = vld [vmem:[%s112_s22 + $0xc8] sm:$0xff] (%p49_p3) }
  0x15   : > { %v141_v8 = vld [vmem:[%s112_s22 + $0x100] sm:$0xff]  ;;  %138 = vst [vmem:[%s109_s23 + $0x30] sm:$0xff] %v137_v6  ;;  %140 = vst [vmem:[%s109_s23 + $0x38] sm:$0xff] %v139_v7  ;;  %v143_v9 = vld [vmem:[%s112_s22 + $0x108] sm:$0xff] }
  0x16   : > { %142 = vst [vmem:[%s109_s23 + $0x40] sm:$0xff] %v141_v8  ;;  %v145_v10 = vld [vmem:[%s112_s22 + $0x140] sm:$0xff]  ;;  %v147_v11 = vld [vmem:[%s112_s22 + $0x148] sm:$0xff]  ;;  %144 = vst [vmem:[%s109_s23 + $0x48] sm:$0xff] %v143_v9 }
  0x17   : > { %146 = vst [vmem:[%s109_s23 + $0x50] sm:$0xff] %v145_v10  ;;  %148 = vst [vmem:[%s109_s23 + $0x58] sm:$0xff] %v147_v11 }
  0x18 PF: > { %p432_p5 = scmp.ge.s32.totalorder %s519_s11, 1  ;;  %p153_p6 = scmp.lt.s32.totalorder %s519_s11, 5 }
  0x1a   : > { %p154_p7 = pnand %p432_p5, %p153_p6 }
  0x1b   : > { %s160_s24 = sand.u32 (!%p154_p7), 1, %s511_s9   ;;  %v521_v12 = vmov (!%p154_p7), 0   ;;  %v189_v25 = vld [vmem:[%s592_s0] sm:$0xf] (!%p154_p7)  ;;  %vm262_vm0 = vcmask (!%p154_p7), 392192   ;;  %s433_s29 = sshll.u32 (!%p154_p7), %s426_s12, 2 }
  0x1c   : > { %157 = sbr.rel (%p154_p7) target bundleno = 264 (0x108), region = 47  ;;  %298 = vmatprep.mubr.bf16.mxu0 (!%p154_p7), %v521_v12  ;;  %339 = vmatprep.mubr.bf16.mxu1 (!%p154_p7), %v521_v12  ;;  %p183_p8 = scmp.lt.s32.totalorder (!%p154_p7), %s433_s29, 15 }
  0x1d   : > { %s453_s25 = smul.u32 (!%p154_p7), 96, %s160_s24 }
  0x1f   : > { %s162_s26 = scalar_lea.vmem (!%p154_p7), [#allocation2], %s453_s25 }
  0x20   : > { %v479_v13 = vld [vmem:[%s162_s26 + $0x4] ss:$16 sps:$4 sm:$0xff] (!%p154_p7)   ;;  %v481_v14 = vld [vmem:[%s162_s26 + $0xc] ss:$16 sps:$4 sm:$0xff] (!%p154_p7)   ;;  %v483_v15 = vld [vmem:[%s162_s26] ss:$16 sps:$4 sm:$0xff] (!%p154_p7)  }
  0x21   : > { %266 = vmatprep.subr.bf16.mxu0 (!%p154_p7), %v479_v13  ;;  %v484_v16 = vld [vmem:[%s162_s26 + $0x8] ss:$16 sps:$4 sm:$0xff] (!%p154_p7)   ;;  %307 = vmatprep.subr.bf16.mxu1 (!%p154_p7), %v481_v14  ;;  %v485_v17 = vld [vmem:[%s162_s26 + $0x24] ss:$16 sps:$4 sm:$0xff] (!%p154_p7)   ;;  %v487_v18 = vld [vmem:[%s162_s26 + $0x2c] ss:$16 sps:$4 sm:$0xff] (!%p154_p7)  }
  0x22   : > { %267 = vmatpush1.bf16.msra.mxu0 (!%p154_p7), %v483_v15  ;;  %308 = vmatpush1.bf16.msra.mxu1 (!%p154_p7), %v484_v16  ;;  %v489_v19 = vld [vmem:[%s162_s26 + $0x20] ss:$16 sps:$4 sm:$0xff] (!%p154_p7)   ;;  %v490_v20 = vld [vmem:[%s162_s26 + $0x28] ss:$16 sps:$4 sm:$0xff] (!%p154_p7)   ;;  %v491_v21 = vld [vmem:[%s162_s26 + $0x44] ss:$16 sps:$4 sm:$0xff] (!%p154_p7)  }
  0x23   : > { %268 = vmatprep.subr.bf16.mxu0 %v485_v17  ;;  %309 = vmatprep.subr.bf16.mxu1 %v487_v18  ;;  %v493_v22 = vld [vmem:[%s162_s26 + $0x4c] ss:$16 sps:$4 sm:$0xff]   ;;  %v495_v23 = vld [vmem:[%s162_s26 + $0x40] ss:$16 sps:$4 sm:$0xff]   ;;  %v496_v24 = vld [vmem:[%s162_s26 + $0x48] ss:$16 sps:$4 sm:$0xff]  }
  0x24   : > { %s599_s29 = smov (!%p183_p8, %s433_s29), 15 }
  0x25   : > { %s434_s30 = sshll.u32 %s599_s29, 3 }
  0x26   : > { %269 = vmatpush1.bf16.msra.mxu0 %v489_v19  ;;  %310 = vmatpush1.bf16.msra.mxu1 %v490_v20  ;;  %s186_s5 = scalar_lea.vmem %s594_s2, %s434_s30 }
  0x27   : > { %270 = vmatprep.subr.bf16.mxu0 %v491_v21  ;;  %311 = vmatprep.subr.bf16.mxu1 %v493_v22 }
  0x2a   : > { %271 = vmatpush1.bf16.msra.mxu0 %v495_v23  ;;  %312 = vmatpush1.bf16.msra.mxu1 %v496_v24 }
  0x2d   : > { %447 = vmatmul.mubr.msk.bf16.vlgmr.msra.gmra.mrb[0].mxu0 %vm262_vm0, %v189_v25  ;;  %448 = vmatmul.mubr.msk.bf16.vlgmr.msra.gmra.mrb[0].mxu1 %vm262_vm0, %v189_v25 }
 0x100   : > { %v300_v26 = vpop.f32.mrb[0].mxu0  ;;  %v341_v27 = vpop.f32.mrb[0].mxu1 }
 0x101   : > { %vm348_vm1 = vcmp.gt.f32.partialorder %v300_v26, 0.0  ;;  %v352_v28 = vmul.f32 0.2, %v300_v26  ;;  %vm350_vm2 = vcmp.gt.f32.partialorder %v341_v27, 0.0  ;;  %v354_v29 = vmul.f32 0.2, %v341_v27 }
 0x102   : > { %v302_v30 = vpop.f32.mrb[1].mxu0  ;;  %v343_v31 = vpop.f32.mrb[1].mxu1 }
 0x103   : > { %v356_v32 = vsel %vm348_vm1, %v300_v26, %v352_v28  ;;  %v358_v33 = vsel %vm350_vm2, %v341_v27, %v354_v29  ;;  %vm349_vm3 = vcmp.gt.f32.partialorder %v302_v30, 0.0  ;;  %v353_v34 = vmul.f32 0.2, %v302_v30  ;;  %v304_v35 = vpop.f32.mrb[2].mxu0  ;;  %v345_v36 = vpop.f32.mrb[2].mxu1 }
 0x104   : > { %360 = vst [vmem:[%s186_s5] sm:$0xff] %v356_v32  ;;  %362 = vst [vmem:[%s186_s5 + $0x10] sm:$0xff] %v358_v33  ;;  %vm351_vm4 = vcmp.gt.f32.partialorder %v343_v31, 0.0  ;;  %v355_v37 = vmul.f32 0.2, %v343_v31  ;;  %v305_v38 = vpop.f32.mrb[3].mxu0  ;;  %v346_v39 = vpop.f32.mrb[3].mxu1 }
 0x105   : > { %v357_v40 = vsel %vm349_vm3, %v302_v30, %v353_v34 }
 0x106   : > { %361 = vst [vmem:[%s186_s5 + $0x8] sm:$0xff] %v357_v40  ;;  %v359_v41 = vsel %vm351_vm4, %v343_v31, %v355_v37 }
 0x107   : > { %363 = vst [vmem:[%s186_s5 + $0x18] sm:$0xff] %v359_v41 }
 0x108 PF: > { %p9_p9 = scmp.ge.s32.totalorder %s554_s13, 6   ;;  %s595_s9 = smov %s515_s10 }
 0x109   : > { %s596_s10 = smov %s563_s16  ;;  %s597_s11 = smov %s554_s13 }
 0x10a   :  { %11 = sbr.rel (!%p9_p9) target bundleno = 2 (0x2), region = 86 }

// kernel: _lambda_.5
= control target key start
LH: loop header
LB: loop body
LE: loop exit
PB: predicated region body
PF: predicated region fallthrough
CT: control target
= control target key end

     0   :  { %v522_v1 = vmov 0   ;;  %s687_s1 = inlined_call_operand.vmem [shape: bf16[128,512], index: 1, kind: input, shape index: {}]   ;;  %s688_s0 = inlined_call_operand.vmem [shape: bf16[16,128], index: 0, kind: input, shape index: {}]   ;;  %s689_s2 = inlined_call_operand.vmem [shape: f32[16,1], index: 2, kind: input, shape index: {}]   ;;  %s690_s3 = inlined_call_operand.vmem [shape: f32[16,1], index: 3, kind: input, shape index: {}]   ;;  %s691_s4 = inlined_call_operand.vmem [shape: f32[16,512], index: 4, kind: output, shape index: {}]  }
   0x1   :  { %v469_v0 = vld [vmem:[%s687_s1 + $0x4] ss:$16 sps:$4 sm:$0xff]   ;;  %250 = vmatprep.mubr.bf16.mxu0 %v522_v1  ;;  %293 = vmatprep.mubr.bf16.mxu1 %v522_v1  ;;  %v471_v2 = vld [vmem:[%s687_s1 + $0xc] ss:$16 sps:$4 sm:$0xff]   ;;  %v473_v3 = vld [vmem:[%s687_s1] ss:$16 sps:$4 sm:$0xff]  }
   0x2   :  { %468 = vset.pattern.permute.xlu1 %v522_v1  ;;  %467 = vset.pattern.permute.xlu0 %v522_v1  ;;  %v474_v4 = vld [vmem:[%s687_s1 + $0x8] ss:$16 sps:$4 sm:$0xff]   ;;  %v475_v5 = vld [vmem:[%s687_s1 + $0x24] ss:$16 sps:$4 sm:$0xff]   ;;  %v477_v6 = vld [vmem:[%s687_s1 + $0x2c] ss:$16 sps:$4 sm:$0xff]  }
   0x3   :  { %218 = vmatprep.subr.bf16.mxu0 %v469_v0  ;;  %261 = vmatprep.subr.bf16.mxu1 %v471_v2  ;;  %v479_v7 = vld [vmem:[%s687_s1 + $0x20] ss:$16 sps:$4 sm:$0xff]   ;;  %v480_v8 = vld [vmem:[%s687_s1 + $0x28] ss:$16 sps:$4 sm:$0xff]   ;;  %v481_v9 = vld [vmem:[%s687_s1 + $0x44] ss:$16 sps:$4 sm:$0xff]  }
   0x4   :  { %219 = vmatpush1.bf16.msra.mxu0 %v473_v3  ;;  %262 = vmatpush1.bf16.msra.mxu1 %v474_v4  ;;  %v483_v10 = vld [vmem:[%s687_s1 + $0x4c] ss:$16 sps:$4 sm:$0xff]   ;;  %v485_v11 = vld [vmem:[%s687_s1 + $0x40] ss:$16 sps:$4 sm:$0xff]   ;;  %v486_v12 = vld [vmem:[%s687_s1 + $0x48] ss:$16 sps:$4 sm:$0xff]  }
   0x5   :  { %220 = vmatprep.subr.bf16.mxu0 %v475_v5  ;;  %263 = vmatprep.subr.bf16.mxu1 %v477_v6  ;;  %v487_v13 = vld [vmem:[%s687_s1 + $0x64] ss:$16 sps:$4 sm:$0xff]   ;;  %v489_v14 = vld [vmem:[%s687_s1 + $0x6c] ss:$16 sps:$4 sm:$0xff]   ;;  %v491_v15 = vld [vmem:[%s687_s1 + $0x60] ss:$16 sps:$4 sm:$0xff]  }
   0x6   :  { %v492_v16 = vld [vmem:[%s687_s1 + $0x68] ss:$16 sps:$4 sm:$0xff]   ;;  %v493_v17 = vld [vmem:[%s687_s1 + $0x84] ss:$16 sps:$4 sm:$0xff]   ;;  %v495_v18 = vld [vmem:[%s687_s1 + $0x8c] ss:$16 sps:$4 sm:$0xff]  }
   0x7   :  { %v497_v19 = vld [vmem:[%s687_s1 + $0x80] ss:$16 sps:$4 sm:$0xff]   ;;  %v498_v20 = vld [vmem:[%s687_s1 + $0x88] ss:$16 sps:$4 sm:$0xff]   ;;  %v499_v21 = vld [vmem:[%s687_s1 + $0xa4] ss:$16 sps:$4 sm:$0xff]  }
   0x8   :  { %221 = vmatpush1.bf16.msra.mxu0 %v479_v7  ;;  %264 = vmatpush1.bf16.msra.mxu1 %v480_v8  ;;  %v501_v22 = vld [vmem:[%s687_s1 + $0xac] ss:$16 sps:$4 sm:$0xff]   ;;  %v503_v23 = vld [vmem:[%s687_s1 + $0xa0] ss:$16 sps:$4 sm:$0xff]   ;;  %v504_v24 = vld [vmem:[%s687_s1 + $0xa8] ss:$16 sps:$4 sm:$0xff]  }
   0x9   :  { %222 = vmatprep.subr.bf16.mxu0 %v481_v9  ;;  %265 = vmatprep.subr.bf16.mxu1 %v483_v10  ;;  %v505_v25 = vld [vmem:[%s687_s1 + $0xc4] ss:$16 sps:$4 sm:$0xff]   ;;  %v507_v26 = vld [vmem:[%s687_s1 + $0xcc] ss:$16 sps:$4 sm:$0xff]   ;;  %v509_v27 = vld [vmem:[%s687_s1 + $0xc0] ss:$16 sps:$4 sm:$0xff]  }
   0xa   :  { %v510_v28 = vld [vmem:[%s687_s1 + $0xc8] ss:$16 sps:$4 sm:$0xff]   ;;  %v511_v29 = vld [vmem:[%s687_s1 + $0xe4] ss:$16 sps:$4 sm:$0xff]   ;;  %v513_v30 = vld [vmem:[%s687_s1 + $0xec] ss:$16 sps:$4 sm:$0xff]  }
   0xb   :  { %v515_v31 = vld [vmem:[%s687_s1 + $0xe0] ss:$16 sps:$4 sm:$0xff]   ;;  %v516_v32 = vld [vmem:[%s687_s1 + $0xe8] ss:$16 sps:$4 sm:$0xff]  }
   0xc   :  { %223 = vmatpush1.bf16.msra.mxu0 %v485_v11  ;;  %266 = vmatpush1.bf16.msra.mxu1 %v486_v12  ;;  %v517_v33 = vld [vmem:[%s688_s0] sm:$0xff]   ;;  %v358_v34 = vld [vmem:[%s689_s2 + $0x8] sm:$0xff] }
   0xd   :  { %224 = vmatprep.subr.bf16.mxu0 %v487_v13  ;;  %267 = vmatprep.subr.bf16.mxu1 %v489_v14  ;;  %v377_v35 = vld [vmem:[%s690_s3] sm:$0xff]  ;;  %v378_v13 = vld [vmem:[%s690_s3 + $0x8] sm:$0xff] }
   0xe   :  { %366 = vperm.xlu1 %468, %v358_v34   ;;  %v357_v50 = vld [vmem:[%s689_s2] sm:$0xff] }
  0x10   :  { %225 = vmatpush1.bf16.msra.mxu0 %v491_v15  ;;  %268 = vmatpush1.bf16.msra.mxu1 %v492_v16 }
  0x11   :  { %226 = vmatprep.subr.bf16.mxu0 %v493_v17  ;;  %269 = vmatprep.subr.bf16.mxu1 %v495_v18 }
  0x12   :  { %381 = vperm.xlu1 %468, %v377_v35  }
  0x14   :  { %227 = vmatpush1.bf16.msra.mxu0 %v497_v19  ;;  %270 = vmatpush1.bf16.msra.mxu1 %v498_v20 }
  0x15   :  { %228 = vmatprep.subr.bf16.mxu0 %v499_v21  ;;  %271 = vmatprep.subr.bf16.mxu1 %v501_v22 }
  0x18   :  { %229 = vmatpush1.bf16.msra.mxu0 %v503_v23  ;;  %272 = vmatpush1.bf16.msra.mxu1 %v504_v24 }
  0x19   :  { %230 = vmatprep.subr.bf16.mxu0 %v505_v25  ;;  %273 = vmatprep.subr.bf16.mxu1 %v507_v26 }
  0x1c   :  { %231 = vmatpush1.bf16.msra.mxu0 %v509_v27  ;;  %274 = vmatpush1.bf16.msra.mxu1 %v510_v28 }
  0x1d   :  { %232 = vmatprep.subr.bf16.mxu0 %v511_v29  ;;  %275 = vmatprep.subr.bf16.mxu1 %v513_v30 }
  0x20   :  { %233 = vmatpush1.bf16.msra.mxu0 %v515_v31  ;;  %276 = vmatpush1.bf16.msra.mxu1 %v516_v32 }
  0x23   :  { %251 = vmatmul.mubr.bf16.vlgmr.msra.gmra.mrb[0].mxu0 %v517_v33  ;;  %294 = vmatmul.mubr.bf16.vlgmr.msra.gmra.mrb[0].mxu1 %v517_v33 }
  0x8d   :  { %v367_v14 = vpop.permute.xlu1 %366 }
  0x91   :  { %v382_v15 = vpop.permute.xlu1 %381 }
  0xf6   :  { %v252_v36 = vpop.f32.mrb[0].mxu0  ;;  %v295_v37 = vpop.f32.mrb[0].mxu1 }
  0xf7   :  { %v254_v38 = vpop.f32.mrb[1].mxu0  ;;  %v297_v39 = vpop.f32.mrb[1].mxu1 }
  0xf8   :  { %v304_v40 = vadd.f32 %v254_v38, %v252_v36  ;;  %v256_v41 = vpop.f32.mrb[2].mxu0  ;;  %v299_v42 = vpop.f32.mrb[2].mxu1 }
  0xf9   :  { %v258_v43 = vpop.f32.mrb[3].mxu0  ;;  %v301_v44 = vpop.f32.mrb[3].mxu1 }
  0xfa   :  { %v309_v45 = vadd.f32 %v258_v43, %v256_v41  ;;  %v305_v46 = vadd.f32 %v304_v40, %v295_v37 }
  0xfc   :  { %v310_v47 = vadd.f32 %v309_v45, %v299_v42  ;;  %v306_v48 = vadd.f32 %v305_v46, %v297_v39 }
  0xfe   :  { %v311_v49 = vadd.f32 %v310_v47, %v301_v44  ;;  %307 = vadd.xlane.f32.xlu0 %v306_v48 }
 0x102   :  { %312 = vadd.xlane.f32.xlu0 %v311_v49 }
 0x118   :  { %361 = vperm.xlu0 %467, %v357_v50  }
 0x18b   :  { %v308_v51 = vpop.xlane.xlu0 %307 }
 0x18c   :  { %v315_v52 = vmul.f32 0.001953125, %v308_v51 }
 0x18e   :  { %v317_v53 = vsub.f32 %v252_v36, %v315_v52  ;;  %v318_v54 = vsub.f32 %v254_v38, %v315_v52  ;;  %v319_v55 = vsub.f32 %v295_v37, %v315_v52  ;;  %v320_v57 = vsub.f32 %v297_v39, %v315_v52 }
 0x18f   :  { %v313_v56 = vpop.xlane.xlu0 %312 }
 0x190   :  { %v316_v58 = vmul.f32 0.001953125, %v313_v56  ;;  %v325_v59 = vmul.f32 %v317_v53, %v317_v53  ;;  %v326_v60 = vmul.f32 %v318_v54, %v318_v54  ;;  %v327_v61 = vmul.f32 %v319_v55, %v319_v55 }
 0x191   :  { %v328_v2 = vmul.f32 %v320_v57, %v320_v57 }
 0x192   :  { %v321_v62 = vsub.f32 %v256_v41, %v316_v58  ;;  %v322_v63 = vsub.f32 %v258_v43, %v316_v58  ;;  %v333_v0 = vadd.f32 %v326_v60, %v325_v59  ;;  %v323_v1 = vsub.f32 %v299_v42, %v316_v58 }
 0x193   :  { %v324_v4 = vsub.f32 %v301_v44, %v316_v58 }
 0x194   :  { %v334_v3 = vadd.f32 %v333_v0, %v327_v61  ;;  %v329_v5 = vmul.f32 %v321_v62, %v321_v62  ;;  %v330_v6 = vmul.f32 %v322_v63, %v322_v63  ;;  %v331_v8 = vmul.f32 %v323_v1, %v323_v1 }
 0x195   :  { %v332_v10 = vmul.f32 %v324_v4, %v324_v4 }
 0x196   :  { %v335_v7 = vadd.f32 %v334_v3, %v328_v2  ;;  %v338_v9 = vadd.f32 %v330_v6, %v329_v5 }
 0x197   :  { %v362_v23 = vpop.permute.xlu0 %361 }
 0x198   :  { %336 = vadd.xlane.f32.xlu1 %v335_v7  ;;  %v339_v11 = vadd.f32 %v338_v9, %v331_v8 }
 0x19a   :  { %v340_v12 = vadd.f32 %v339_v11, %v332_v10 }
 0x19c   :  { %341 = vadd.xlane.f32.xlu1 %v340_v12 }
 0x1ad   :  { %386 = vperm.xlu1 %468, %v378_v13  }
 0x225   :  { %v337_v16 = vpop.xlane.xlu1 %336 }
 0x226   :  { %v343_v17 = vmul.f32 0.001953125, %v337_v16 }
 0x228   :  { %v345_v18 = vadd.f32 1e-05, %v343_v17 }
 0x229   :  { %v342_v19 = vpop.xlane.xlu1 %341 }
 0x22a   :  { %518 = vrsqrt.f32 %v345_v18  ;;  %v344_v20 = vmul.f32 0.001953125, %v342_v19 }
 0x22c   :  { %v346_v21 = vadd.f32 1e-05, %v344_v20 }
 0x22d   :  { %v387_v45 = vpop.permute.xlu1 %386 }
 0x22e   :  { %520 = vrsqrt.f32 %v346_v21 }
 0x234   :  { %v519_v22 = vpop.eup %518 }
 0x235   :  { %v349_v24 = vmul.f32 %v519_v22, %v317_v53  ;;  %v350_v25 = vmul.f32 %v519_v22, %v318_v54  ;;  %v351_v26 = vmul.f32 %v519_v22, %v319_v55  ;;  %v352_v27 = vmul.f32 %v519_v22, %v320_v57 }
 0x237   :  { %v369_v28 = vmul.f32 %v362_v23, %v349_v24  ;;  %v370_v29 = vmul.f32 %v362_v23, %v350_v25  ;;  %v371_v30 = vmul.f32 %v362_v23, %v351_v26  ;;  %v372_v31 = vmul.f32 %v362_v23, %v352_v27 }
 0x238   :  { %v521_v32 = vpop.eup %520 }
 0x239   :  { %v353_v33 = vmul.f32 %v521_v32, %v321_v62  ;;  %v354_v34 = vmul.f32 %v521_v32, %v322_v63  ;;  %v355_v35 = vmul.f32 %v521_v32, %v323_v1  ;;  %v356_v36 = vmul.f32 %v521_v32, %v324_v4 }
 0x23a   :  { %v389_v37 = vadd.f32 %v382_v15, %v369_v28  ;;  %v390_v38 = vadd.f32 %v382_v15, %v370_v29  ;;  %v391_v39 = vadd.f32 %v382_v15, %v371_v30  ;;  %v392_v40 = vadd.f32 %v382_v15, %v372_v31 }
 0x23b   :  { %v373_v41 = vmul.f32 %v367_v14, %v353_v33  ;;  %v374_v42 = vmul.f32 %v367_v14, %v354_v34  ;;  %v375_v43 = vmul.f32 %v367_v14, %v355_v35  ;;  %v376_v44 = vmul.f32 %v367_v14, %v356_v36 }
 0x23c   :  { %vm397_vm0 = vcmp.gt.f32.partialorder %v389_v37, 0.0  ;;  %vm398_vm1 = vcmp.gt.f32.partialorder %v390_v38, 0.0  ;;  %vm399_vm2 = vcmp.gt.f32.partialorder %v391_v39, 0.0  ;;  %vm400_vm3 = vcmp.gt.f32.partialorder %v392_v40, 0.0 }
 0x23d   :  { %v393_v46 = vadd.f32 %v387_v45, %v373_v41  ;;  %v394_v47 = vadd.f32 %v387_v45, %v374_v42  ;;  %v395_v48 = vadd.f32 %v387_v45, %v375_v43  ;;  %v396_v49 = vadd.f32 %v387_v45, %v376_v44 }
 0x23e   :  { %v405_v50 = vmul.f32 0.2, %v389_v37  ;;  %v406_v51 = vmul.f32 0.2, %v390_v38  ;;  %v407_v52 = vmul.f32 0.2, %v391_v39 }
 0x23f   :  { %vm401_vm4 = vcmp.gt.f32.partialorder %v393_v46, 0.0  ;;  %vm402_vm5 = vcmp.gt.f32.partialorder %v394_v47, 0.0  ;;  %vm403_vm6 = vcmp.gt.f32.partialorder %v395_v48, 0.0  ;;  %vm404_vm7 = vcmp.gt.f32.partialorder %v396_v49, 0.0 }
 0x240   :  { %v409_v53 = vmul.f32 0.2, %v393_v46  ;;  %v410_v54 = vmul.f32 0.2, %v394_v47  ;;  %v411_v55 = vmul.f32 0.2, %v395_v48  ;;  %v413_v56 = vsel %vm397_vm0, %v389_v37, %v405_v50 }
 0x241   :  { %v412_v57 = vmul.f32 0.2, %v396_v49  ;;  %v408_v58 = vmul.f32 0.2, %v392_v40  ;;  %v414_v59 = vsel %vm398_vm1, %v390_v38, %v406_v51  ;;  %v415_v60 = vsel %vm399_vm2, %v391_v39, %v407_v52  ;;  %421 = vst [vmem:[%s691_s4] sm:$0xff] %v413_v56 }
 0x242   :  { %v417_v61 = vsel %vm401_vm4, %v393_v46, %v409_v53  ;;  %v418_v62 = vsel %vm402_vm5, %v394_v47, %v410_v54  ;;  %v419_v63 = vsel %vm403_vm6, %v395_v48, %v411_v55  ;;  %422 = vst [vmem:[%s691_s4 + $0x8] sm:$0xff] %v414_v59  ;;  %423 = vst [vmem:[%s691_s4 + $0x10] sm:$0xff] %v415_v60 }
 0x243   :  { %v420_v0 = vsel %vm404_vm7, %v396_v49, %v412_v57  ;;  %425 = vst [vmem:[%s691_s4 + $0x20] sm:$0xff] %v417_v61  ;;  %426 = vst [vmem:[%s691_s4 + $0x28] sm:$0xff] %v418_v62  ;;  %v416_v1 = vsel %vm400_vm3, %v392_v40, %v408_v58 }
 0x244   :  { %427 = vst [vmem:[%s691_s4 + $0x30] sm:$0xff] %v419_v63  ;;  %428 = vst [vmem:[%s691_s4 + $0x38] sm:$0xff] %v420_v0 }
 0x245   :  { %424 = vst [vmem:[%s691_s4 + $0x18] sm:$0xff] %v416_v1 }

// kernel: _lambda_.6
= control target key start
LH: loop header
LB: loop body
LE: loop exit
PB: predicated region body
PF: predicated region fallthrough
CT: control target
= control target key end

     0   :  { %v437_v20 = vmov 0   ;;  %s559_s1 = inlined_call_operand.vmem [shape: bf16[256,128], index: 1, kind: input, shape index: {}]   ;;  %s560_s0 = inlined_call_operand.vmem [shape: bf16[32,256], index: 0, kind: input, shape index: {}]   ;;  %s561_s2 = inlined_call_operand.vmem [shape: f32[32,1], index: 2, kind: input, shape index: {}]   ;;  %s562_s3 = inlined_call_operand.vmem [shape: f32[32,1], index: 3, kind: input, shape index: {}]   ;;  %s563_s4 = inlined_call_operand.vmem [shape: f32[32,128], index: 4, kind: output, shape index: {}]  }
   0x1   :  { %v407_v0 = vld [vmem:[%s559_s1 + $0x40] sm:$0xff]   ;;  %v409_v2 = vld [vmem:[%s559_s1 + $0x48] sm:$0xff]   ;;  %v411_v4 = vld [vmem:[%s559_s1 + $0x50] sm:$0xff]   ;;  %406 = vset.pattern.permute.xlu1 %v437_v20  ;;  %405 = vset.pattern.permute.xlu0 %v437_v20 }
   0x2   :  { %v408_v1 = vld [vmem:[%s559_s1] sm:$0xff]   ;;  %360 = vmatprep.subr.bf16.mxu0 %v407_v0  ;;  %388 = vmatprep.subr.bf16.mxu1 %v407_v0  ;;  %v410_v3 = vld [vmem:[%s559_s1 + $0x8] sm:$0xff]   ;;  %v412_v5 = vld [vmem:[%s559_s1 + $0x10] sm:$0xff]  }
   0x3   :  { %361 = vmatpush3.bf16.msra.mxu0 %v408_v1  ;;  %396 = vmatpush3.bf16.msra.mxu1 %v408_v1  ;;  %v413_v6 = vld [vmem:[%s559_s1 + $0x58] sm:$0xff]   ;;  %v415_v8 = vld [vmem:[%s559_s1 + $0x60] sm:$0xff]   ;;  %v417_v10 = vld [vmem:[%s559_s1 + $0x68] sm:$0xff]  }
   0x4   :  { %362 = vmatprep.subr.bf16.mxu0 %v409_v2  ;;  %389 = vmatprep.subr.bf16.mxu1 %v409_v2  ;;  %v414_v7 = vld [vmem:[%s559_s1 + $0x18] sm:$0xff]   ;;  %v416_v9 = vld [vmem:[%s559_s1 + $0x20] sm:$0xff]   ;;  %v418_v13 = vld [vmem:[%s559_s1 + $0x28] sm:$0xff]  }
   0x5   :  { %v425_v11 = vld [vmem:[%s560_s0 + $0x4] ss:$8 sps:$4 sm:$0xff]   ;;  %v428_v12 = vld [vmem:[%s560_s0 + $0x14] ss:$8 sps:$4 sm:$0xff]   ;;  %v423_v18 = vld [vmem:[%s560_s0] ss:$8 sps:$4 sm:$0xff]  }
   0x6   :  { %v419_v14 = vld [vmem:[%s559_s1 + $0x70] sm:$0xff]   ;;  %202 = vmatprep.mubr.bf16.mxu0 %v425_v11  ;;  %210 = vmatprep.mubr.bf16.mxu1 %v428_v12  ;;  %v421_v16 = vld [vmem:[%s559_s1 + $0x78] sm:$0xff]   ;;  %v265_v33 = vld [vmem:[%s561_s2 + $0x8] sm:$0xff] }
   0x7   :  { %363 = vmatpush3.bf16.msra.mxu0 %v410_v3  ;;  %397 = vmatpush3.bf16.msra.mxu1 %v410_v3  ;;  %v420_v15 = vld [vmem:[%s559_s1 + $0x30] sm:$0xff]   ;;  %v422_v17 = vld [vmem:[%s559_s1 + $0x38] sm:$0xff]   ;;  %v292_v36 = vld [vmem:[%s562_s3] sm:$0xff] }
   0x8   :  { %364 = vmatprep.subr.bf16.mxu0 %v411_v4  ;;  %390 = vmatprep.subr.bf16.mxu1 %v411_v4  ;;  %v426_v19 = vld [vmem:[%s560_s0 + $0x10] ss:$8 sps:$4 sm:$0xff]   ;;  %v293_v37 = vld [vmem:[%s562_s3 + $0x8] sm:$0xff]  ;;  %v264_v56 = vld [vmem:[%s561_s2] sm:$0xff] }
   0x9   :  { %v266_v34 = vld [vmem:[%s561_s2 + $0x10] sm:$0xff]  ;;  %v267_v35 = vld [vmem:[%s561_s2 + $0x18] sm:$0xff] }
   0xa   :  { %v294_v38 = vld [vmem:[%s562_s3 + $0x10] sm:$0xff]  ;;  %v295_v55 = vld [vmem:[%s562_s3 + $0x18] sm:$0xff] }
   0xb   :  { %365 = vmatpush3.bf16.msra.mxu0 %v412_v5  ;;  %398 = vmatpush3.bf16.msra.mxu1 %v412_v5 }
   0xc   :  { %366 = vmatprep.subr.bf16.mxu0 %v413_v6  ;;  %391 = vmatprep.subr.bf16.mxu1 %v413_v6 }
   0xf   :  { %367 = vmatpush3.bf16.msra.mxu0 %v414_v7  ;;  %399 = vmatpush3.bf16.msra.mxu1 %v414_v7 }
  0x10   :  { %368 = vmatprep.subr.bf16.mxu0 %v415_v8  ;;  %392 = vmatprep.subr.bf16.mxu1 %v415_v8 }
  0x13   :  { %369 = vmatpush3.bf16.msra.mxu0 %v416_v9  ;;  %400 = vmatpush3.bf16.msra.mxu1 %v416_v9 }
  0x14   :  { %370 = vmatprep.subr.bf16.mxu0 %v417_v10  ;;  %393 = vmatprep.subr.bf16.mxu1 %v417_v10 }
  0x17   :  { %371 = vmatpush3.bf16.msra.mxu0 %v418_v13  ;;  %401 = vmatpush3.bf16.msra.mxu1 %v418_v13 }
  0x18   :  { %372 = vmatprep.subr.bf16.mxu0 %v419_v14  ;;  %394 = vmatprep.subr.bf16.mxu1 %v419_v14 }
  0x1b   :  { %373 = vmatpush3.bf16.msra.mxu0 %v420_v15  ;;  %402 = vmatpush3.bf16.msra.mxu1 %v420_v15 }
  0x1c   :  { %374 = vmatprep.subr.bf16.mxu0 %v421_v16  ;;  %395 = vmatprep.subr.bf16.mxu1 %v421_v16 }
  0x1f   :  { %375 = vmatpush3.bf16.msra.mxu0 %v422_v17  ;;  %403 = vmatpush3.bf16.msra.mxu1 %v422_v17 }
  0x22   :  { %203 = vmatmul.mubr.bf16.vlgmr.msra.gmra.mrb[0].mxu0 %v423_v18  ;;  %211 = vmatmul.mubr.bf16.vlgmr.msra.gmra.mrb[0].mxu1 %v426_v19 }
  0xf5   :  { %v376_v21 = vpop.f32.mrb[0].mxu0  ;;  %v382_v22 = vpop.f32.mrb[0].mxu1 }
  0xf6   :  { %v377_v23 = vpop.f32.mrb[1].mxu0  ;;  %v383_v24 = vpop.f32.mrb[1].mxu1 }
  0xf7   :  { %v378_v25 = vadd.f32 %v377_v23, %v376_v21  ;;  %v384_v26 = vadd.f32 %v383_v24, %v382_v22  ;;  %v379_v27 = vpop.f32.mrb[2].mxu0  ;;  %v385_v28 = vpop.f32.mrb[2].mxu1 }
  0xf8   :  { %v380_v29 = vpop.f32.mrb[3].mxu0  ;;  %v386_v30 = vpop.f32.mrb[3].mxu1 }
  0xf9   :  { %v381_v31 = vadd.f32 %v380_v29, %v379_v27  ;;  %v387_v32 = vadd.f32 %v386_v30, %v385_v28  ;;  %223 = vadd.xlane.f32.xlu1 %v384_v26  ;;  %219 = vadd.xlane.f32.xlu0 %v378_v25 }
  0xfd   :  { %225 = vadd.xlane.f32.xlu1 %v387_v32  ;;  %221 = vadd.xlane.f32.xlu0 %v381_v31 }
 0x10e   :  { %275 = vperm.xlu1 %406, %v265_v33  }
 0x112   :  { %280 = vperm.xlu1 %406, %v266_v34  }
 0x116   :  { %285 = vperm.xlu1 %406, %v267_v35  }
 0x11a   :  { %298 = vperm.xlu1 %406, %v292_v36  }
 0x11e   :  { %303 = vperm.xlu1 %406, %v293_v37  }
 0x122   :  { %308 = vperm.xlu1 %406, %v294_v38  }
 0x186   :  { %v224_v39 = vpop.xlane.xlu1 %223  ;;  %v220_v40 = vpop.xlane.xlu0 %219 }
 0x187   :  { %v230_v41 = vmul.f32 0.0078125, %v224_v39  ;;  %v228_v42 = vmul.f32 0.0078125, %v220_v40 }
 0x189   :  { %v232_v43 = vsub.f32 %v378_v25, %v228_v42  ;;  %v234_v46 = vsub.f32 %v384_v26, %v230_v41 }
 0x18a   :  { %v226_v44 = vpop.xlane.xlu1 %225  ;;  %v222_v45 = vpop.xlane.xlu0 %221 }
 0x18b   :  { %v231_v47 = vmul.f32 0.0078125, %v226_v44  ;;  %v229_v48 = vmul.f32 0.0078125, %v222_v45  ;;  %v236_v49 = vmul.f32 %v232_v43, %v232_v43  ;;  %v238_v52 = vmul.f32 %v234_v46, %v234_v46 }
 0x18d   :  { %v233_v50 = vsub.f32 %v381_v31, %v229_v48  ;;  %240 = vadd.xlane.f32.xlu0 %v236_v49  ;;  %v235_v51 = vsub.f32 %v387_v32, %v231_v47 }
 0x18e   :  { %v276_v57 = vpop.permute.xlu1 %275 }
 0x18f   :  { %v237_v53 = vmul.f32 %v233_v50, %v233_v50  ;;  %v239_v54 = vmul.f32 %v235_v51, %v235_v51 }
 0x191   :  { %244 = vadd.xlane.f32.xlu0 %v238_v52  ;;  %242 = vadd.xlane.f32.xlu1 %v237_v53 }
 0x192   :  { %v281_v58 = vpop.permute.xlu1 %280 }
 0x195   :  { %246 = vadd.xlane.f32.xlu1 %v239_v54 }
 0x196   :  { %v286_v59 = vpop.permute.xlu1 %285 }
 0x19a   :  { %v299_v60 = vpop.permute.xlu1 %298 }
 0x19e   :  { %v304_v61 = vpop.permute.xlu1 %303 }
 0x1a2   :  { %v309_v62 = vpop.permute.xlu1 %308 }
 0x1a6   :  { %313 = vperm.xlu1 %406, %v295_v55  }
 0x1a7   :  { %270 = vperm.xlu0 %405, %v264_v56  }
 0x21a   :  { %v241_v63 = vpop.xlane.xlu0 %240 }
 0x21b   :  { %v248_v0 = vmul.f32 0.0078125, %v241_v63 }
 0x21d   :  { %v252_v1 = vadd.f32 1e-05, %v248_v0 }
 0x21e   :  { %v243_v2 = vpop.xlane.xlu1 %242  ;;  %v245_v3 = vpop.xlane.xlu0 %244 }
 0x21f   :  { %429 = vrsqrt.f32 %v252_v1  ;;  %v249_v4 = vmul.f32 0.0078125, %v243_v2  ;;  %v250_v5 = vmul.f32 0.0078125, %v245_v3 }
 0x221   :  { %v253_v6 = vadd.f32 1e-05, %v249_v4  ;;  %v254_v7 = vadd.f32 1e-05, %v250_v5 }
 0x222   :  { %v247_v8 = vpop.xlane.xlu1 %246 }
 0x223   :  { %431 = vrsqrt.f32 %v253_v6  ;;  %v251_v9 = vmul.f32 0.0078125, %v247_v8 }
 0x224   :  { %433 = vrsqrt.f32 %v254_v7 }
 0x225   :  { %v255_v10 = vadd.f32 1e-05, %v251_v9 }
 0x226   :  { %v271_v12 = vpop.permute.xlu0 %270  ;;  %v314_v30 = vpop.permute.xlu1 %313 }
 0x227   :  { %435 = vrsqrt.f32 %v255_v10 }
 0x229   :  { %v430_v11 = vpop.eup %429 }
 0x22a   :  { %v260_v13 = vmul.f32 %v430_v11, %v232_v43 }
 0x22c   :  { %v288_v14 = vmul.f32 %v271_v12, %v260_v13 }
 0x22d   :  { %v432_v15 = vpop.eup %431 }
 0x22e   :  { %v434_v16 = vpop.eup %433  ;;  %v261_v17 = vmul.f32 %v432_v15, %v233_v50  ;;  %v316_v18 = vadd.f32 %v299_v60, %v288_v14 }
 0x22f   :  { %v262_v19 = vmul.f32 %v434_v16, %v234_v46 }
 0x230   :  { %v289_v20 = vmul.f32 %v276_v57, %v261_v17  ;;  %vm320_vm0 = vcmp.gt.f32.partialorder %v316_v18, 0.0  ;;  %v324_v21 = vmul.f32 0.2, %v316_v18 }
 0x231   :  { %v436_v22 = vpop.eup %435  ;;  %v290_v23 = vmul.f32 %v281_v58, %v262_v19 }
 0x232   :  { %v317_v24 = vadd.f32 %v304_v61, %v289_v20  ;;  %v263_v25 = vmul.f32 %v436_v22, %v235_v51  ;;  %v328_v26 = vsel %vm320_vm0, %v316_v18, %v324_v21 }
 0x233   :  { %v318_v27 = vadd.f32 %v309_v62, %v290_v23  ;;  %332 = vst [vmem:[%s563_s4] sm:$0xff] %v328_v26 }
 0x234   :  { %v291_v28 = vmul.f32 %v286_v59, %v263_v25  ;;  %vm321_vm1 = vcmp.gt.f32.partialorder %v317_v24, 0.0  ;;  %v325_v29 = vmul.f32 0.2, %v317_v24 }
 0x235   :  { %vm322_vm2 = vcmp.gt.f32.partialorder %v318_v27, 0.0  ;;  %v326_v31 = vmul.f32 0.2, %v318_v27 }
 0x236   :  { %v329_v32 = vsel %vm321_vm1, %v317_v24, %v325_v29  ;;  %v319_v33 = vadd.f32 %v314_v30, %v291_v28 }
 0x237   :  { %333 = vst [vmem:[%s563_s4 + $0x8] sm:$0xff] %v329_v32  ;;  %v330_v34 = vsel %vm322_vm2, %v318_v27, %v326_v31 }
 0x238   :  { %vm323_vm3 = vcmp.gt.f32.partialorder %v319_v33, 0.0  ;;  %v327_v35 = vmul.f32 0.2, %v319_v33  ;;  %334 = vst [vmem:[%s563_s4 + $0x10] sm:$0xff] %v330_v34 }
 0x23a   :  { %v331_v36 = vsel %vm323_vm3, %v319_v33, %v327_v35 }
 0x23b   :  { %335 = vst [vmem:[%s563_s4 + $0x18] sm:$0xff] %v331_v36 }

// kernel: _lambda_.7
= control target key start
LH: loop header
LB: loop body
LE: loop exit
PB: predicated region body
PF: predicated region fallthrough
CT: control target
= control target key end

     0   :  { %s1603_s0 = inlined_call_operand.vmem [shape: bf16[64,512], index: 0, kind: input, shape index: {}]   ;;  %s1604_s1 = inlined_call_operand.vmem [shape: bf16[512,32], index: 1, kind: input, shape index: {}]   ;;  %s1605_s2 = inlined_call_operand.vmem [shape: f32[64,1], index: 2, kind: input, shape index: {}]   ;;  %s1606_s3 = inlined_call_operand.vmem [shape: f32[64,1], index: 3, kind: input, shape index: {}]   ;;  %s1607_s4 = inlined_call_operand.vmem [shape: f32[64,32], index: 4, kind: input, shape index: {}]   ;;  %s1608_s5 = inlined_call_operand.vmem [shape: f32[32,2], index: 5, kind: input, shape index: {}]   ;;  %s1609_s6 = inlined_call_operand.vmem [shape: f32[64,32], index: 6, kind: output, shape index: {0}]   ;;  %s1610_s7 = inlined_call_operand.hbm [shape: f32[1,2], index: 7, kind: output, shape index: {1}]  }
   0x1   :  { %v1039_v0 = vld [vmem:[%s1604_s1 + $0x40] sm:$0xff]   ;;  %v1043_v4 = vld [vmem:[%s1604_s1 + $0x48] sm:$0xff]   ;;  %v1047_v8 = vld [vmem:[%s1604_s1 + $0x50] sm:$0xff]  }
   0x2   :  { %v1040_v1 = vld [vmem:[%s1604_s1 + $0xc0] sm:$0xff]   ;;  %930 = vmatprep.subr.bf16.mxu0 %v1039_v0  ;;  %v1044_v5 = vld [vmem:[%s1604_s1 + $0xc8] sm:$0xff]   ;;  %v1048_v9 = vld [vmem:[%s1604_s1 + $0xd0] sm:$0xff]  }
   0x3   :  { %v1041_v2 = vld [vmem:[%s1604_s1] sm:$0xff]   ;;  %970 = vmatprep.subr.bf16.mxu1 %v1040_v1  ;;  %v1045_v6 = vld [vmem:[%s1604_s1 + $0x8] sm:$0xff]   ;;  %v1049_v10 = vld [vmem:[%s1604_s1 + $0x10] sm:$0xff]  }
   0x4   :  { %v1042_v3 = vld [vmem:[%s1604_s1 + $0x80] sm:$0xff]   ;;  %931 = vmatpush3.bf16.msra.mxu0 %v1041_v2  ;;  %v1046_v7 = vld [vmem:[%s1604_s1 + $0x88] sm:$0xff]   ;;  %v1050_v11 = vld [vmem:[%s1604_s1 + $0x90] sm:$0xff]  }
   0x5   :  { %971 = vmatpush3.bf16.msra.mxu1 %v1042_v3  ;;  %932 = vmatprep.subr.bf16.mxu0 %v1043_v4  ;;  %v1051_v12 = vld [vmem:[%s1604_s1 + $0x58] sm:$0xff]   ;;  %v1055_v16 = vld [vmem:[%s1604_s1 + $0x60] sm:$0xff]   ;;  %v1059_v20 = vld [vmem:[%s1604_s1 + $0x68] sm:$0xff]  }
   0x6   :  { %972 = vmatprep.subr.bf16.mxu1 %v1044_v5  ;;  %v1052_v13 = vld [vmem:[%s1604_s1 + $0xd8] sm:$0xff]   ;;  %v1056_v17 = vld [vmem:[%s1604_s1 + $0xe0] sm:$0xff]   ;;  %v1060_v21 = vld [vmem:[%s1604_s1 + $0xe8] sm:$0xff]  }
   0x7   :  { %v1053_v14 = vld [vmem:[%s1604_s1 + $0x18] sm:$0xff]   ;;  %v1057_v18 = vld [vmem:[%s1604_s1 + $0x20] sm:$0xff]   ;;  %v1061_v22 = vld [vmem:[%s1604_s1 + $0x28] sm:$0xff]  }
   0x8   :  { %933 = vmatpush3.bf16.msra.mxu0 %v1045_v6  ;;  %v1054_v15 = vld [vmem:[%s1604_s1 + $0x98] sm:$0xff]   ;;  %v1058_v19 = vld [vmem:[%s1604_s1 + $0xa0] sm:$0xff]   ;;  %v1062_v23 = vld [vmem:[%s1604_s1 + $0xa8] sm:$0xff]  }
   0x9   :  { %973 = vmatpush3.bf16.msra.mxu1 %v1046_v7  ;;  %934 = vmatprep.subr.bf16.mxu0 %v1047_v8  ;;  %v1063_v24 = vld [vmem:[%s1604_s1 + $0x70] sm:$0xff]   ;;  %v1067_v28 = vld [vmem:[%s1604_s1 + $0x78] sm:$0xff]  }
   0xa   :  { %974 = vmatprep.subr.bf16.mxu1 %v1048_v9  ;;  %v1064_v25 = vld [vmem:[%s1604_s1 + $0xf0] sm:$0xff]   ;;  %v1068_v29 = vld [vmem:[%s1604_s1 + $0xf8] sm:$0xff]  }
   0xb   :  { %v1065_v26 = vld [vmem:[%s1604_s1 + $0x30] sm:$0xff]   ;;  %v1069_v30 = vld [vmem:[%s1604_s1 + $0x38] sm:$0xff]  }
   0xc   :  { %935 = vmatpush3.bf16.msra.mxu0 %v1049_v10  ;;  %v1066_v27 = vld [vmem:[%s1604_s1 + $0xb0] sm:$0xff]   ;;  %v1070_v31 = vld [vmem:[%s1604_s1 + $0xb8] sm:$0xff]  }
   0xd   :  { %975 = vmatpush3.bf16.msra.mxu1 %v1050_v11  ;;  %936 = vmatprep.subr.bf16.mxu0 %v1051_v12  ;;  %v1071_v32 = vld [vmem:[%s1603_s0] ss:$16 sps:$4 sm:$0xff]   ;;  %v1073_v33 = vld [vmem:[%s1603_s0 + $0x4] ss:$16 sps:$4 sm:$0xff]   ;;  %v1074_v34 = vld [vmem:[%s1603_s0 + $0x8] ss:$16 sps:$4 sm:$0xff]  }
   0xe   :  { %976 = vmatprep.subr.bf16.mxu1 %v1052_v13  ;;  %v1076_v35 = vld [vmem:[%s1603_s0 + $0xc] ss:$16 sps:$4 sm:$0xff]   ;;  %411 = vmatprep.mubr.bf16.mxu0 %v1073_v33  ;;  %v1077_v36 = vld [vmem:[%s1603_s0 + $0x24] ss:$16 sps:$4 sm:$0xff]   ;;  %v1081_v38 = vld [vmem:[%s1603_s0 + $0x20] ss:$16 sps:$4 sm:$0xff]  }
   0xf   :  { %476 = vmatprep.mubr.bf16.mxu1 %v1076_v35  ;;  %v1079_v37 = vld [vmem:[%s1603_s0 + $0x2c] ss:$16 sps:$4 sm:$0xff]   ;;  %v1082_v39 = vld [vmem:[%s1603_s0 + $0x28] ss:$16 sps:$4 sm:$0xff]   ;;  %v1083_v40 = vld [vmem:[%s1603_s0 + $0x44] ss:$16 sps:$4 sm:$0xff]  }
  0x10   :  { %937 = vmatpush3.bf16.msra.mxu0 %v1053_v14  ;;  %v1085_v41 = vld [vmem:[%s1603_s0 + $0x4c] ss:$16 sps:$4 sm:$0xff]  }
  0x11   :  { %977 = vmatpush3.bf16.msra.mxu1 %v1054_v15  ;;  %938 = vmatprep.subr.bf16.mxu0 %v1055_v16 }
  0x12   :  { %978 = vmatprep.subr.bf16.mxu1 %v1056_v17 }
  0x14   :  { %939 = vmatpush3.bf16.msra.mxu0 %v1057_v18 }
  0x15   :  { %979 = vmatpush3.bf16.msra.mxu1 %v1058_v19  ;;  %940 = vmatprep.subr.bf16.mxu0 %v1059_v20 }
  0x16   :  { %980 = vmatprep.subr.bf16.mxu1 %v1060_v21 }
  0x18   :  { %941 = vmatpush3.bf16.msra.mxu0 %v1061_v22 }
  0x19   :  { %981 = vmatpush3.bf16.msra.mxu1 %v1062_v23  ;;  %942 = vmatprep.subr.bf16.mxu0 %v1063_v24 }
  0x1a   :  { %982 = vmatprep.subr.bf16.mxu1 %v1064_v25 }
  0x1c   :  { %943 = vmatpush3.bf16.msra.mxu0 %v1065_v26 }
  0x1d   :  { %983 = vmatpush3.bf16.msra.mxu1 %v1066_v27  ;;  %944 = vmatprep.subr.bf16.mxu0 %v1067_v28 }
  0x1e   :  { %984 = vmatprep.subr.bf16.mxu1 %v1068_v29 }
  0x20   :  { %945 = vmatpush3.bf16.msra.mxu0 %v1069_v30 }
  0x21   :  { %985 = vmatpush3.bf16.msra.mxu1 %v1070_v31 }
  0x23   :  { %412 = vmatmul.mubr.bf16.vlgmr.msra.gmra.mrb[0].mxu0 %v1071_v32 }
  0x24   :  { %477 = vmatmul.mubr.bf16.vlgmr.msra.gmra.mrb[0].mxu1 %v1074_v34  ;;  %419 = vmatprep.mubr.bf16.mxu0 %v1077_v36 }
  0x25   :  { %484 = vmatprep.mubr.bf16.mxu1 %v1079_v37 }
  0x26   :  { %13 = vsyncpa [#allocation3], 0  ;;  %v1087_v42 = vld [vmem:[%s1603_s0 + $0x40] ss:$16 sps:$4 sm:$0xff]   ;;  %v1088_v43 = vld [vmem:[%s1603_s0 + $0x48] ss:$16 sps:$4 sm:$0xff]  }
  0x27   :  { %v1089_v44 = vld [vmem:[%s1603_s0 + $0x64] ss:$16 sps:$4 sm:$0xff]   ;;  %v1091_v45 = vld [vmem:[%s1603_s0 + $0x6c] ss:$16 sps:$4 sm:$0xff]   ;;  %v1093_v46 = vld [vmem:[%s1603_s0 + $0x60] ss:$16 sps:$4 sm:$0xff]  }
  0x28   :  { %v1094_v47 = vld [vmem:[%s1603_s0 + $0x68] ss:$16 sps:$4 sm:$0xff]   ;;  %v1153_v48 = vmov 0   ;;  %vm509_vm0 = vcmask 261120   ;;  %vm1155_vm1 = vmmov 0   ;;  %vm861_vm2 = vcmask 8192  }
  0x29   :  { %1038 = vset.pattern.permute.xlu1 %v1153_v48  ;;  %1037 = vset.pattern.permute.xlu0 %v1153_v48  ;;  %v616_v48 = vld [vmem:[%s1605_s2 + $0x8] sm:$0xff] }
  0x2b   :  { %420 = vmatmul.mubr.bf16.gmra.mrb[4].mxu0 %v1081_v38 }
  0x2c   :  { %485 = vmatmul.mubr.bf16.gmra.mrb[4].mxu1 %v1082_v39  ;;  %427 = vmatprep.mubr.bf16.mxu0 %v1083_v40 }
  0x2d   :  { %492 = vmatprep.mubr.bf16.mxu1 %v1085_v41 }
  0x33   :  { %428 = vmatmul.mubr.bf16.gmra.mrb[8].mxu0 %v1087_v42 }
  0x34   :  { %493 = vmatmul.mubr.bf16.gmra.mrb[8].mxu1 %v1088_v43  ;;  %435 = vmatprep.mubr.bf16.mxu0 %v1089_v44 }
  0x35   :  { %500 = vmatprep.mubr.bf16.mxu1 %v1091_v45 }
  0x3b   :  { %436 = vmatmul.mubr.bf16.gmra.mrb[12].mxu0 %v1093_v46 }
  0x3c   :  { %501 = vmatmul.mubr.bf16.gmra.mrb[12].mxu1 %v1094_v47 }
  0xf6   :  { %v946_v49 = vpop.f32.mrb[0].mxu0 }
  0xf7   :  { %v986_v50 = vpop.f32.mrb[0].mxu1  ;;  %v947_v51 = vpop.f32.mrb[1].mxu0 }
  0xf8   :  { %v948_v52 = vadd.f32 %v947_v51, %v946_v49  ;;  %v987_v53 = vpop.f32.mrb[1].mxu1  ;;  %v949_v54 = vpop.f32.mrb[2].mxu0  ;;  %v617_v49 = vld [vmem:[%s1605_s2 + $0x10] sm:$0xff]  ;;  %v615_v51 = vld [vmem:[%s1605_s2] sm:$0xff] }
  0xf9   :  { %v988_v55 = vadd.f32 %v987_v53, %v986_v50  ;;  %v989_v56 = vpop.f32.mrb[2].mxu1  ;;  %v950_v57 = vpop.f32.mrb[3].mxu0  ;;  %v671_v50 = vld [vmem:[%s1606_s3] sm:$0xff]  ;;  %v620_v53 = vld [vmem:[%s1605_s2 + $0x28] sm:$0xff] }
  0xfa   :  { %v951_v58 = vadd.f32 %v950_v57, %v949_v54  ;;  %v990_v59 = vpop.f32.mrb[3].mxu1  ;;  %v618_v54 = vld [vmem:[%s1605_s2 + $0x18] sm:$0xff] }
  0xfb   :  { %v991_v60 = vadd.f32 %v990_v59, %v989_v56  ;;  %v1342_v61 = vadd.f32 %v988_v55, %v948_v52  ;;  %v672_v52 = vld [vmem:[%s1606_s3 + $0x8] sm:$0xff]  ;;  %v621_v55 = vld [vmem:[%s1605_s2 + $0x30] sm:$0xff]  ;;  %v622_v57 = vld [vmem:[%s1605_s2 + $0x38] sm:$0xff] }
  0xfc   :  { %v673_v56 = vld [vmem:[%s1606_s3 + $0x10] sm:$0xff]  ;;  %v674_v59 = vld [vmem:[%s1606_s3 + $0x18] sm:$0xff] }
  0xfd   :  { %v510_v62 = vsel %vm509_vm0, %v1342_v61, 0.0  ;;  %v1346_v63 = vadd.f32 %v991_v60, %v951_v58  ;;  %v619_v58 = vld [vmem:[%s1605_s2 + $0x20] sm:$0xff] }
  0xfe   :  { %511 = vadd.xlane.f32.xlu0 %v510_v62  ;;  %v952_v0 = vpop.f32.mrb[4].mxu0  ;;  %v675_v62 = vld [vmem:[%s1606_s3 + $0x20] sm:$0xff] }
  0xff   :  { %v992_v1 = vpop.f32.mrb[4].mxu1  ;;  %v953_v2 = vpop.f32.mrb[5].mxu0  ;;  %v513_v9 = vsel %vm509_vm0, %v1346_v63, 0.0 }
 0x100   :  { %v954_v3 = vadd.f32 %v953_v2, %v952_v0  ;;  %v993_v4 = vpop.f32.mrb[5].mxu1  ;;  %v955_v5 = vpop.f32.mrb[6].mxu0  ;;  %v676_v0 = vld [vmem:[%s1606_s3 + $0x28] sm:$0xff] }
 0x101   :  { %v994_v6 = vadd.f32 %v993_v4, %v992_v1  ;;  %v995_v7 = vpop.f32.mrb[6].mxu1  ;;  %v956_v8 = vpop.f32.mrb[7].mxu0 }
 0x102   :  { %v957_v10 = vadd.f32 %v956_v8, %v955_v5  ;;  %v996_v11 = vpop.f32.mrb[7].mxu1  ;;  %514 = vadd.xlane.f32.xlu0 %v513_v9 }
 0x103   :  { %v997_v12 = vadd.f32 %v996_v11, %v995_v7  ;;  %v1350_v13 = vadd.f32 %v994_v6, %v954_v3 }
 0x105   :  { %v516_v14 = vsel %vm509_vm0, %v1350_v13, 0.0  ;;  %v1354_v15 = vadd.f32 %v997_v12, %v957_v10 }
 0x106   :  { %517 = vadd.xlane.f32.xlu1 %v516_v14  ;;  %v958_v16 = vpop.f32.mrb[8].mxu0 }
 0x107   :  { %v998_v17 = vpop.f32.mrb[8].mxu1  ;;  %v959_v18 = vpop.f32.mrb[9].mxu0  ;;  %v519_v25 = vsel %vm509_vm0, %v1354_v15, 0.0 }
 0x108   :  { %v960_v19 = vadd.f32 %v959_v18, %v958_v16  ;;  %v999_v20 = vpop.f32.mrb[9].mxu1  ;;  %v961_v21 = vpop.f32.mrb[10].mxu0 }
 0x109   :  { %v1000_v22 = vadd.f32 %v999_v20, %v998_v17  ;;  %v1001_v23 = vpop.f32.mrb[10].mxu1  ;;  %v962_v24 = vpop.f32.mrb[11].mxu0 }
 0x10a   :  { %v963_v26 = vadd.f32 %v962_v24, %v961_v21  ;;  %v1002_v27 = vpop.f32.mrb[11].mxu1  ;;  %520 = vadd.xlane.f32.xlu1 %v519_v25 }
 0x10b   :  { %v1003_v28 = vadd.f32 %v1002_v27, %v1001_v23  ;;  %v1358_v29 = vadd.f32 %v1000_v22, %v960_v19 }
 0x10d   :  { %v522_v30 = vsel %vm509_vm0, %v1358_v29, 0.0  ;;  %v1362_v31 = vadd.f32 %v1003_v28, %v963_v26 }
 0x10e   :  { %523 = vadd.xlane.f32.xlu0 %v522_v30  ;;  %v964_v32 = vpop.f32.mrb[12].mxu0 }
 0x10f   :  { %v1004_v33 = vpop.f32.mrb[12].mxu1  ;;  %v965_v34 = vpop.f32.mrb[13].mxu0  ;;  %v525_v35 = vsel %vm509_vm0, %v1362_v31, 0.0 }
 0x110   :  { %v966_v36 = vadd.f32 %v965_v34, %v964_v32  ;;  %v1005_v37 = vpop.f32.mrb[13].mxu1  ;;  %526 = vadd.xlane.f32.xlu1 %v525_v35  ;;  %v967_v38 = vpop.f32.mrb[14].mxu0  ;;  %v678_v34 = vld [vmem:[%s1606_s3 + $0x38] sm:$0xff] }
 0x111   :  { %v1006_v39 = vadd.f32 %v1005_v37, %v1004_v33  ;;  %v1007_v40 = vpop.f32.mrb[14].mxu1  ;;  %v968_v41 = vpop.f32.mrb[15].mxu0 }
 0x112   :  { %v969_v42 = vadd.f32 %v968_v41, %v967_v38  ;;  %v1008_v43 = vpop.f32.mrb[15].mxu1 }
 0x113   :  { %v1366_v44 = vadd.f32 %v1006_v39, %v966_v36  ;;  %v1009_v45 = vadd.f32 %v1008_v43, %v1007_v40 }
 0x115   :  { %v528_v46 = vsel %vm509_vm0, %v1366_v44, 0.0  ;;  %v1370_v47 = vadd.f32 %v1009_v45, %v969_v42 }
 0x116   :  { %529 = vadd.xlane.f32.xlu0 %v528_v46 }
 0x117   :  { %v531_v60 = vsel %vm509_vm0, %v1370_v47, 0.0 }
 0x121   :  { %630 = vperm.xlu1 %1038, %v616_v48  }
 0x125   :  { %635 = vperm.xlu1 %1038, %v617_v49   ;;  %v677_v49 = vld [vmem:[%s1606_s3 + $0x30] sm:$0xff] }
 0x129   :  { %681 = vperm.xlu1 %1038, %v671_v50  }
 0x12c   :  { %625 = vperm.xlu0 %1037, %v615_v51  }
 0x12d   :  { %686 = vperm.xlu1 %1038, %v672_v52  }
 0x130   :  { %650 = vperm.xlu0 %1037, %v620_v53  }
 0x131   :  { %640 = vperm.xlu1 %1038, %v618_v54  }
 0x134   :  { %655 = vperm.xlu0 %1037, %v621_v55  }
 0x135   :  { %691 = vperm.xlu1 %1038, %v673_v56  }
 0x138   :  { %660 = vperm.xlu0 %1037, %v622_v57  }
 0x139   :  { %645 = vperm.xlu1 %1038, %v619_v58  }
 0x13d   :  { %696 = vperm.xlu1 %1038, %v674_v59  }
 0x161   :  { %532 = vadd.xlane.f32.xlu1 %v531_v60 }
 0x172   :  { %701 = vperm.xlu1 %1038, %v675_v62  }
 0x176   :  { %706 = vperm.xlu1 %1038, %v676_v0  }
 0x18b   :  { %v512_v1 = vpop.xlane.xlu0 %511 }
 0x18c   :  { %v535_v2 = vmul.f32 0.03125, %v512_v1 }
 0x18e   :  { %v1417_v3 = vsub.f32 %v1342_v61, %v535_v2 }
 0x18f   :  { %v515_v4 = vpop.xlane.xlu0 %514 }
 0x190   :  { %v536_v5 = vmul.f32 0.03125, %v515_v4  ;;  %v551_v6 = vmul.f32 %v1417_v3, %v1417_v3 }
 0x192   :  { %v1422_v7 = vsub.f32 %v1346_v63, %v536_v5  ;;  %v559_v8 = vsel %vm509_vm0, %v551_v6, 0.0  ;;  %v780_v5 = vld [vmem:[%s1608_s5] sm:$0xff]  ;;  %v781_v6 = vld [vmem:[%s1608_s5 + $0x8] sm:$0xff] }
 0x193   :  { %v518_v9 = vpop.xlane.xlu1 %517  ;;  %560 = vadd.xlane.f32.xlu0 %v559_v8  ;;  %v782_v8 = vld [vmem:[%s1608_s5 + $0x10] sm:$0xff] }
 0x194   :  { %v537_v10 = vmul.f32 0.03125, %v518_v9  ;;  %v552_v11 = vmul.f32 %v1422_v7, %v1422_v7  ;;  %v1154_v9 = vmov 0.0|0.0  }
 0x195   :  { %1026 = vmatprep.subr.bf16.mxu0 %v1154_v9 }
 0x196   :  { %v1428_v12 = vsub.f32 %v1350_v13, %v537_v10  ;;  %v562_v17 = vsel %vm509_vm0, %v552_v11, 0.0  ;;  %v1027_v10 = vpack.c.bf16 %v781_v6, %v780_v5  ;;  %v783_v11 = vld [vmem:[%s1608_s5 + $0x18] sm:$0xff] }
 0x197   :  { %v521_v61 = vpop.xlane.xlu1 %520 }
 0x198   :  { %v538_v14 = vmul.f32 0.03125, %v521_v61  ;;  %v553_v16 = vmul.f32 %v1428_v12, %v1428_v12  ;;  %1028 = vmatpush3.bf16.msra.mxu0 %v1027_v10 }
 0x199   :  { %1029 = vmatprep.subr.bf16.mxu0 %v1154_v9 }
 0x19a   :  { %v1434_v63 = vsub.f32 %v1354_v15, %v538_v14  ;;  %563 = vadd.xlane.f32.xlu1 %v562_v17  ;;  %v565_v18 = vsel %vm509_vm0, %v553_v16, 0.0  ;;  %v1156_v16 = vmov 0.0  }
 0x19b   :  { %566 = vadd.xlane.f32.xlu0 %v565_v18  ;;  %v524_v19 = vpop.xlane.xlu0 %523  ;;  %1023 = vmatprep.mubr.msk.f32.mxu0 %vm1155_vm1, %v1156_v16 }
 0x19c   :  { %v539_v20 = vmul.f32 0.03125, %v524_v19  ;;  %v554_v13 = vmul.f32 %v1434_v63, %v1434_v63  ;;  %v1030_v19 = vpack.c.bf16 %v783_v11, %v782_v8 }
 0x19d   :  { %v527_v21 = vpop.xlane.xlu1 %526 }
 0x19e   :  { %v1440_v22 = vsub.f32 %v1358_v29, %v539_v20  ;;  %v540_v23 = vmul.f32 0.03125, %v527_v21  ;;  %v568_v24 = vsel %vm509_vm0, %v554_v13, 0.0  ;;  %1031 = vmatpush3.bf16.msra.mxu0 %v1030_v19 }
 0x19f   :  { %569 = vadd.xlane.f32.xlu1 %v568_v24 }
 0x1a0   :  { %v1444_v15 = vsub.f32 %v1362_v31, %v540_v23  ;;  %v555_v25 = vmul.f32 %v1440_v22, %v1440_v22 }
 0x1a1   :  { %v1461_v35 = vpop.permute.xlu1 %630 }
 0x1a2   :  { %v571_v26 = vsel %vm509_vm0, %v555_v25, 0.0  ;;  %v556_v27 = vmul.f32 %v1444_v15, %v1444_v15 }
 0x1a3   :  { %572 = vadd.xlane.f32.xlu0 %v571_v26  ;;  %v530_v28 = vpop.xlane.xlu0 %529 }
 0x1a4   :  { %v541_v30 = vmul.f32 0.03125, %v530_v28  ;;  %v574_v29 = vsel %vm509_vm0, %v556_v27, 0.0 }
 0x1a5   :  { %575 = vadd.xlane.f32.xlu1 %v574_v29  ;;  %v1463_v36 = vpop.permute.xlu1 %635 }
 0x1a6   :  { %v1453_v32 = vsub.f32 %v1366_v44, %v541_v30 }
 0x1a8   :  { %v557_v31 = vmul.f32 %v1453_v32, %v1453_v32 }
 0x1a9   :  { %v682_v37 = vpop.permute.xlu1 %681 }
 0x1aa   :  { %v577_v33 = vsel %vm509_vm0, %v557_v31, 0.0 }
 0x1ab   :  { %578 = vadd.xlane.f32.xlu0 %v577_v33  ;;  %v626_v50 = vpop.permute.xlu0 %625 }
 0x1ad   :  { %v1465_v38 = vpop.permute.xlu1 %686 }
 0x1af   :  { %v1484_v51 = vpop.permute.xlu0 %650 }
 0x1b1   :  { %v1467_v39 = vpop.permute.xlu1 %640 }
 0x1b3   :  { %v1486_v52 = vpop.permute.xlu0 %655 }
 0x1b5   :  { %v1469_v40 = vpop.permute.xlu1 %691 }
 0x1b7   :  { %v1488_v53 = vpop.permute.xlu0 %660 }
 0x1b9   :  { %v1471_v41 = vpop.permute.xlu1 %645 }
 0x1bd   :  { %v1473_v42 = vpop.permute.xlu1 %696 }
 0x1c1   :  { %716 = vperm.xlu0 %1037, %v678_v34  }
 0x1ee   :  { %v533_v43 = vpop.xlane.xlu1 %532 }
 0x1ef   :  { %v542_v44 = vmul.f32 0.03125, %v533_v43 }
 0x1f1   :  { %v1476_v45 = vsub.f32 %v1370_v47, %v542_v44 }
 0x1f2   :  { %v1490_v47 = vpop.permute.xlu1 %701 }
 0x1f3   :  { %v558_v46 = vmul.f32 %v1476_v45, %v1476_v45 }
 0x1f5   :  { %v580_v48 = vsel %vm509_vm0, %v558_v46, 0.0 }
 0x1f6   :  { %581 = vadd.xlane.f32.xlu1 %v580_v48  ;;  %v1492_v56 = vpop.permute.xlu1 %706 }
 0x207   :  { %711 = vperm.xlu1 %1038, %v677_v49  }
 0x220   :  { %v561_v54 = vpop.xlane.xlu0 %560 }
 0x221   :  { %v583_v55 = vmul.f32 0.03125, %v561_v54  ;;  %v746_v54 = vld [vmem:[%s1607_s4 + $0x18] sm:$0xff] }
 0x223   :  { %v591_v57 = vadd.f32 1e-05, %v583_v55 }
 0x225   :  { %1095 = vrsqrt.f32 %v591_v57 }
 0x227   :  { %v564_v58 = vpop.xlane.xlu1 %563 }
 0x228   :  { %v584_v59 = vmul.f32 0.03125, %v564_v58  ;;  %v567_v60 = vpop.xlane.xlu0 %566 }
 0x229   :  { %v585_v62 = vmul.f32 0.03125, %v567_v60 }
 0x22a   :  { %v592_v0 = vadd.f32 1e-05, %v584_v59 }
 0x22b   :  { %v593_v1 = vadd.f32 1e-05, %v585_v62 }
 0x22c   :  { %1097 = vrsqrt.f32 %v592_v0  ;;  %v570_v2 = vpop.xlane.xlu1 %569  ;;  %v747_v0 = vld [vmem:[%s1607_s4 + $0x20] sm:$0xff] }
 0x22d   :  { %1099 = vrsqrt.f32 %v593_v1  ;;  %v586_v4 = vmul.f32 0.03125, %v570_v2 }
 0x22f   :  { %v1096_v61 = vpop.eup %1095  ;;  %v594_v14 = vadd.f32 1e-05, %v586_v4  ;;  %v748_v4 = vld [vmem:[%s1607_s4 + $0x28] sm:$0xff] }
 0x230   :  { %v607_v17 = vmul.f32 %v1096_v61, %v1417_v3  ;;  %v573_v18 = vpop.xlane.xlu0 %572 }
 0x231   :  { %1101 = vrsqrt.f32 %v594_v14  ;;  %v587_v20 = vmul.f32 0.03125, %v573_v18 }
 0x232   :  { %v663_v13 = vmul.f32 %v626_v50, %v607_v17  ;;  %v576_v21 = vpop.xlane.xlu1 %575 }
 0x233   :  { %v595_v23 = vadd.f32 1e-05, %v587_v20  ;;  %v588_v24 = vmul.f32 0.03125, %v576_v21 }
 0x234   :  { %v719_v25 = vadd.f32 %v682_v37, %v663_v13 }
 0x235   :  { %1103 = vrsqrt.f32 %v595_v23  ;;  %v596_v26 = vadd.f32 1e-05, %v588_v24 }
 0x236   :  { %v1098_v27 = vpop.eup %1097  ;;  %1105 = vtanh.f32 %v719_v25 }
 0x237   :  { %v1100_v28 = vpop.eup %1099  ;;  %v608_v30 = vmul.f32 %v1098_v27, %v1422_v7  ;;  %1107 = vrsqrt.f32 %v596_v26 }
 0x238   :  { %v609_v3 = vmul.f32 %v1100_v28, %v1428_v12  ;;  %v579_v16 = vpop.xlane.xlu0 %578 }
 0x239   :  { %v664_v29 = vmul.f32 %v1461_v35, %v608_v30  ;;  %v589_v17 = vmul.f32 0.03125, %v579_v16 }
 0x23a   :  { %v665_v31 = vmul.f32 %v1463_v36, %v609_v3 }
 0x23b   :  { %v1102_v33 = vpop.eup %1101  ;;  %v720_v34 = vadd.f32 %v1465_v38, %v664_v29  ;;  %v743_v38 = vld [vmem:[%s1607_s4] sm:$0xff]  ;;  %v597_v18 = vadd.f32 1e-05, %v589_v17 }
 0x23c   :  { %v721_v37 = vadd.f32 %v1469_v40, %v665_v31  ;;  %v610_v43 = vmul.f32 %v1102_v33, %v1434_v63 }
 0x23d   :  { %1109 = vtanh.f32 %v720_v34 }
 0x23e   :  { %1111 = vtanh.f32 %v721_v37  ;;  %v666_v44 = vmul.f32 %v1467_v39, %v610_v43 }
 0x23f   :  { %v1104_v46 = vpop.eup %1103 }
 0x240   :  { %v1106_v7 = vpop.eup %1105  ;;  %v722_v48 = vadd.f32 %v1473_v42, %v666_v44  ;;  %v611_v12 = vmul.f32 %v1104_v46, %v1440_v22  ;;  %v744_v22 = vld [vmem:[%s1607_s4 + $0x8] sm:$0xff] }
 0x241   :  { %v1108_v35 = vpop.eup %1107  ;;  %735 = vst.msk [vmem:[%s1609_s6] sm:$0xff] %vm509_vm0, %v1106_v7 }
 0x242   :  { %1113 = vtanh.f32 %v722_v48  ;;  %v667_v36 = vmul.f32 %v1471_v41, %v611_v12  ;;  %v612_v63 = vmul.f32 %v1108_v35, %v1444_v15  ;;  %v745_v41 = vld [vmem:[%s1607_s4 + $0x10] sm:$0xff]  ;;  %v751_v15 = vmul.f32 %v1106_v7, %v743_v38 }
 0x244   :  { %v723_v39 = vadd.f32 %v1490_v47, %v667_v36  ;;  %v668_v40 = vmul.f32 %v1484_v51, %v612_v63 }
 0x246   :  { %1115 = vtanh.f32 %v723_v39  ;;  %v724_v42 = vadd.f32 %v1492_v56, %v668_v40  ;;  %v759_v56 = vsel %vm509_vm0, %v751_v15, 0.0 }
 0x247   :  { %v1110_v49 = vpop.eup %1109 }
 0x248   :  { %v1112_v50 = vpop.eup %1111  ;;  %736 = vst.msk [vmem:[%s1609_s6 + $0x8] sm:$0xff] %vm509_vm0, %v1110_v49  ;;  %1117 = vtanh.f32 %v724_v42  ;;  %v752_v51 = vmul.f32 %v1110_v49, %v744_v22 }
 0x249   :  { %737 = vst.msk [vmem:[%s1609_s6 + $0x10] sm:$0xff] %vm509_vm0, %v1112_v50  ;;  %v753_v47 = vmul.f32 %v1112_v50, %v745_v41  ;;  %1119 = vrsqrt.f32 %v597_v18 }
 0x24a   :  { %v760_v55 = vsel %vm509_vm0, %v752_v51, 0.0 }
 0x24b   :  { %v761_v57 = vadd.f32 %v760_v55, %v759_v56  ;;  %v762_v58 = vsel %vm509_vm0, %v753_v47, 0.0 }
 0x24c   :  { %v1114_v59 = vpop.eup %1113 }
 0x24d   :  { %738 = vst.msk [vmem:[%s1609_s6 + $0x18] sm:$0xff] %vm509_vm0, %v1114_v59  ;;  %v754_v60 = vmul.f32 %v1114_v59, %v746_v54  ;;  %v763_v62 = vadd.f32 %v762_v58, %v761_v57 }
 0x24f   :  { %v764_v1 = vsel %vm509_vm0, %v754_v60, 0.0 }
 0x250   :  { %v1116_v2 = vpop.eup %1115  ;;  %v765_v5 = vadd.f32 %v764_v1, %v763_v62 }
 0x251   :  { %739 = vst.msk [vmem:[%s1609_s6 + $0x20] sm:$0xff] %vm509_vm0, %v1116_v2  ;;  %v755_v6 = vmul.f32 %v1116_v2, %v747_v0 }
 0x252   :  { %v1118_v8 = vpop.eup %1117 }
 0x253   :  { %740 = vst.msk [vmem:[%s1609_s6 + $0x28] sm:$0xff] %vm509_vm0, %v1118_v8  ;;  %v756_v9 = vmul.f32 %v1118_v8, %v748_v4  ;;  %v766_v10 = vsel %vm509_vm0, %v755_v6, 0.0  ;;  %v1120_v19 = vpop.eup %1119 }
 0x254   :  { %v767_v11 = vadd.f32 %v766_v10, %v765_v5  ;;  %v613_v20 = vmul.f32 %v1120_v19, %v1453_v32  ;;  %v717_v32 = vpop.permute.xlu0 %716 }
 0x255   :  { %v768_v61 = vsel %vm509_vm0, %v756_v9, 0.0 }
 0x256   :  { %v769_v14 = vadd.f32 %v768_v61, %v767_v11  ;;  %v669_v24 = vmul.f32 %v1486_v52, %v613_v20  ;;  %v749_v52 = vld [vmem:[%s1607_s4 + $0x30] sm:$0xff] }
 0x283   :  { %v582_v13 = vpop.xlane.xlu1 %581 }
 0x284   :  { %v590_v21 = vmul.f32 0.03125, %v582_v13 }
 0x286   :  { %v598_v23 = vadd.f32 1e-05, %v590_v21 }
 0x287   :  { %v712_v25 = vpop.permute.xlu1 %711 }
 0x288   :  { %1121 = vrsqrt.f32 %v598_v23  ;;  %v725_v26 = vadd.f32 %v712_v25, %v669_v24 }
 0x28a   :  { %1123 = vtanh.f32 %v725_v26 }
 0x292   :  { %v1122_v27 = vpop.eup %1121 }
 0x293   :  { %v614_v28 = vmul.f32 %v1122_v27, %v1476_v45  ;;  %v750_v45 = vld [vmem:[%s1607_s4 + $0x38] sm:$0xff]  ;;  %s1157_s4 = smov [#allocation2]  }
 0x294   :  { %v1124_v30 = vpop.eup %1123 }
 0x295   :  { %v670_v3 = vmul.f32 %v1488_v53, %v614_v28  ;;  %741 = vst.msk [vmem:[%s1609_s6 + $0x30] sm:$0xff] %vm509_vm0, %v1124_v30  ;;  %v757_v31 = vmul.f32 %v1124_v30, %v749_v52 }
 0x297   :  { %v726_v29 = vadd.f32 %v717_v32, %v670_v3  ;;  %v770_v33 = vsel %vm509_vm0, %v757_v31, 0.0 }
 0x298   :  { %v771_v37 = vadd.f32 %v770_v33, %v769_v14 }
 0x299   :  { %1125 = vtanh.f32 %v726_v29 }
 0x2a3   :  { %v1126_v53 = vpop.eup %1125 }
 0x2a4   :  { %742 = vst.msk [vmem:[%s1609_s6 + $0x38] sm:$0xff] %vm509_vm0, %v1126_v53  ;;  %v758_v34 = vmul.f32 %v1126_v53, %v750_v45  ;;  %s871_s6 = sshll.u32 %s1157_s4, 4  ;;  %s872_s6 = int_to_ptr.vmem [resolvable:$true] %s871_s6 }
 0x2a5   :  { %s1129_s18 = scalar_lea.vmem %s872_s6, 16  ;;  %s1133_s19 = scalar_lea.vmem %s872_s6, 32 }
 0x2a6   :  { %v772_v43 = vsel %vm509_vm0, %v758_v34, 0.0  ;;  %p1130_p0 = scmp.ne.s32.totalorder %s872_s6, %s1129_s18  ;;  %p1134_p1 = scmp.lt.s32.totalorder %s872_s6, %s872_s6 }
 0x2a7   :  { %v773_v44 = vadd.f32 %v772_v43, %v771_v37  ;;  %p1135_p2 = scmp.lt.s32.totalorder %s1133_s19, %s1129_s18 }
 0x2a9   :  { %v774_v46 = vrot.slane %v773_v44, 4  ;;  %p1136_p3 = por %p1135_p2, %p1134_p1 }
 0x2ab   :  { %v775_v7 = vadd.f32 %v774_v46, %v773_v44  ;;  %p1137_p4 = pnand %p1136_p3, %p1130_p0 }
 0x2ad   :  { %v776_v48 = vrot.slane %v775_v7, 2 }
 0x2af   :  { %v777_v12 = vadd.f32 %v776_v48, %v775_v7 }
 0x2b1   :  { %v778_v35 = vrot.slane %v777_v12, 1 }
 0x2b3   :  { %v779_v36 = vadd.f32 %v778_v35, %v777_v12 }
 0x2b5   :  { %1024 = vmatmul.mubr.msk.f32.vlgmr.msra.gmra.mrb[16].mxu0 %vm509_vm0, %v779_v36 }
 0x388   :  { %v853_v63 = vpop.f32.mrb[16].mxu0 }
 0x389   :  { %v857_v38 = vmul.f32 0.5, %v853_v63  ;;  %v1025_v39 = vpop.f32.mrb[17].mxu0 }
 0x38b   :  { %1127 = vtanh.f32 %v857_v38 }
 0x395   :  { %v1128_v40 = vpop.eup %1127 }
 0x396   :  { %v859_v22 = vadd.f32 1.0, %v1128_v40 }
 0x398   :  { %v860_v42 = vmul.f32 0.5, %v859_v22 }
 0x39a   :  { %862 = vst.msk [vmem:[#allocation2] sm:$0x1] %vm861_vm2, %v860_v42 }
 0x39b   :  { %1140 = shalt.err (!%p1137_p4)
}
 0x39c   :  { %s1141_s22 = scalar_lea.hbm %s1610_s7, 16 }
 0x39d   :  { %p1142_p5 = scmp.ne.s32.totalorder %s1610_s7, %s1141_s22  ;;  %p1145_p6 = scmp.lt.u32.totalorder %s1141_s22, %s1610_s7 }
 0x39f   :  { %p1147_p7 = pnand %p1145_p6, %p1142_p5 }
 0x3a1   :  { %1150 = shalt.err (!%p1147_p7)
}
 0x3a2   :  { %874 = dma.vmem_to_hbm [thread:$0]  %s872_s6, 16, %s1610_s7, [#allocation3]  }
 0x3a3   :  { %1151 = dma.done.wait [#allocation3], 16  }
 0x3a4   :  { %1152 = vsyncadd [#allocation3], 4294967280 }
 0x3a5   :  { %880 = vsyncpa [#allocation3], 1 }

</bundles_post_ra>
